<compile_context>
chip_gen: v7x
topology: tpu7x:2x2x1
jax: 0.10.0
libtpu: 0.0.40
codegen_flags: <defaults>
</compile_context>

<pallas_src>
import functools

import jax
import jax.numpy as jnp
from jax import lax
from jax.experimental import pallas as pl
from jax.experimental.pallas import tpu as pltpu


# ------------------------------ fused kernel -----------------------------------
def _fused_preconv_kernel(x_ref, mask2_ref, mask3_ref,
                          bn1_s_ref, bn1_b_ref, w1_ref,
                          bn2_s_ref, bn2_b_ref, w2_ref,
                          bn3_s_ref, bn3_b_ref, w3_ref, b3_ref,
                          ws_ref, bs_ref,
                          sew1_ref, seb1_ref, sew2_ref, seb2_ref,
                          o_ref, *, H, W, nb):
    HW = H * W
    L = nb * HW
    f32 = jnp.float32
    bf16 = jnp.bfloat16

    x = x_ref[...].astype(f32)                                   # (Cin, L)

    def bn_relu(v, s_ref, b_ref):
        # folded eval-mode BatchNorm + ReLU; (C,1) params broadcast along lanes
        return jnp.maximum(v * s_ref[...] + b_ref[...], 0.0)

    # Roll offsets for the nine taps of a 'same' 3x3 conv (row-major flat spatial).
    tap_offsets = tuple((kh - 1) * W + (kw - 1)
                        for kh in range(3) for kw in range(3))

    def conv3x3(h, w_ref, mask_ref):
        # im2col operand (9*Cin, L): each tap is a lane rotation of h; the
        # precomputed mask zeroes out-of-image pixels (incl. cross-image wrap).
        pieces = [h if d == 0 else pltpu.roll(h, shift=(-d) % L, axis=1)
                  for d in tap_offsets]
        stacked = jnp.concatenate(pieces, axis=0) * mask_ref[...]
        # ONE K = 9*Cin MXU matmul (bf16 operands, f32 accumulation).
        return jnp.dot(w_ref[...], stacked.astype(bf16),
                       preferred_element_type=f32)

    # ----- main path (conv1/conv2 biases already folded into bn2/bn3 shifts) -----
    h = bn_relu(x, bn1_s_ref, bn1_b_ref)                         # BN1 + ReLU
    h = jnp.dot(w1_ref[...], h.astype(bf16),
                preferred_element_type=f32)                      # 1x1 conv
    h = bn_relu(h, bn2_s_ref, bn2_b_ref)                         # BN2 + ReLU
    h = conv3x3(h, w2_ref, mask2_ref)                            # 3x3 conv
    h = bn_relu(h, bn3_s_ref, bn3_b_ref)                         # BN3 + ReLU
    h = conv3x3(h, w3_ref, mask3_ref) + b3_ref[...]              # 3x3 conv

    # ----- 1x1 shortcut on the RAW input, issued before the serial SE tail -----
    sc = jnp.dot(ws_ref[...], x.astype(bf16),
                 preferred_element_type=f32) + bs_ref[...]

    # ----- SE attention, per folded image (nb is a small static constant) -----
    C3 = h.shape[0]
    inv_hw = 1.0 / HW
    gate_pieces = []
    for n in range(nb):                                          # unrolled, tiny
        h_n = h[:, n * HW:(n + 1) * HW]                          # static, lane-aligned
        pooled = jnp.sum(h_n, axis=1, keepdims=True) * inv_hw    # (C3, 1)
        z = jnp.maximum(
            jnp.dot(sew1_ref[...], pooled, preferred_element_type=f32)
            + seb1_ref[...], 0.0)
        g = jax.nn.sigmoid(
            jnp.dot(sew2_ref[...], z, preferred_element_type=f32)
            + seb2_ref[...])                                     # (C3, 1)
        gate_pieces.append(jnp.broadcast_to(g, (C3, HW)))
    gate = gate_pieces[0] if nb == 1 else jnp.concatenate(gate_pieces, axis=1)

    # lane-dense unmasked store: (C3, nb*HW) with nb*HW a multiple of 128
    o_ref[...] = (h * gate + sc).astype(o_ref.dtype)


# --------------------------------- wrapper --------------------------------------
def pre_conv_block(x_nchw, kp, *, strides=(1, 1), nb=None):
    """Fused PreConvBlock forward.  x_nchw: (N, Cin, H, W) -> (N, f3, H, W)."""
    assert strides == (1, 1), "TODO(synk): only stride (1,1) is implemented."
    N, Cin, H, W = x_nchw.shape
    HW = H * W
    C3 = kp["ws"].shape[0]
    f1 = kp["w2"].shape[1] // 9          # conv2 input channels
    f2 = kp["w3"].shape[1] // 9          # conv3 input channels

    if nb is None:
        # Fold batch into the lane axis but keep >= 2 grid steps when possible
        # (v7x megacore wants grid length a multiple of 2; v5e/v6e are single-TC
        # and prefer the largest nb -- pass nb=N explicitly there if desired).
        nb = N // 2 if (N % 2 == 0 and N >= 2) else 1
    assert N % nb == 0, (N, nb)
    G = N // nb
    L = nb * HW

    # (N, Cin, H, W) -> (G, Cin, nb*HW): tiny HBM-side layout op, outside the kernel.
    x2 = (x_nchw.reshape(G, nb, Cin, HW)
                .transpose(0, 2, 1, 3)
                .reshape(G, Cin, L))

    # Precomputed boundary masks for the nine 3x3 taps, pre-expanded to the conv's
    # input-channel count (avoids per-tap sublane broadcasts in the kernel) and
    # tiled per image along the lane axis (prevents cross-image leakage of rolls).
    def build_tap_mask(C):
        ii = jnp.arange(H, dtype=jnp.int32).reshape(H, 1)
        jj = jnp.arange(W, dtype=jnp.int32).reshape(1, W)
        rows = []
        for kh in range(3):
            for kw in range(3):
                valid = ((ii + kh - 1 >= 0) & (ii + kh - 1 < H) &
                         (jj + kw - 1 >= 0) & (jj + kw - 1 < W)).reshape(1, HW)
                rows.append(jnp.tile(valid.astype(jnp.float32), (C, nb)))
        return jnp.concatenate(rows, axis=0)          # (9*C, nb*HW)

    mask2 = build_tap_mask(f1)
    mask3 = mask2 if f2 == f1 else build_tap_mask(f2)

    args = (x2, mask2, mask3,
            kp["bn1_s"], kp["bn1_b"], kp["w1"],
            kp["bn2_s"], kp["bn2_b"], kp["w2"],
            kp["bn3_s"], kp["bn3_b"], kp["w3"], kp["b3"],
            kp["ws"], kp["bs"],
            kp["se_w1"], kp["se_b1"], kp["se_w2"], kp["se_b2"])

    def full_spec(a):
        return pl.BlockSpec(a.shape, lambda n, _r=a.ndim: (0,) * _r)

    out = pl.pallas_call(
        functools.partial(_fused_preconv_kernel, H=H, W=W, nb=nb),
        out_shape=jax.ShapeDtypeStruct((G, C3, L), x_nchw.dtype),
        grid=(G,),
        in_specs=[pl.BlockSpec((None, Cin, L), lambda n: (n, 0, 0))]
                 + [full_spec(a) for a in args[1:]],
        out_specs=pl.BlockSpec((None, C3, L), lambda n: (n, 0, 0)),
        compiler_params=pltpu.CompilerParams(dimension_semantics=("parallel",)),
    )(*args)

    # (G, C3, nb*HW) -> (N, C3, H, W): inverse tiny layout op.
    return (out.reshape(G, C3, nb, HW)
               .transpose(0, 2, 1, 3)
               .reshape(N, C3, H, W))


# ------------------------- parameters (PyTorch layouts) --------------------------
def init_torch_params(key, in_c, filters, ksize, r):
    f1, f2, f3 = filters
    kh, kw = ksize
    cr = max(f3 // r, 1)
    keys = iter(jax.random.split(key, 40))
    nrm = lambda shape, s=0.1: s * jax.random.normal(next(keys), shape, jnp.float32)

    def bn(c):
        return dict(gamma=1.0 + nrm((c,)), beta=nrm((c,)), mean=nrm((c,)),
                    var=jnp.abs(jax.random.normal(next(keys), (c,), jnp.float32)) + 0.5)

    return dict(
        bn1=bn(in_c),
        w1=nrm((f1, in_c, 1, 1)), b1=nrm((f1,)),
        bn2=bn(f1),
        w2=nrm((f2, f1, kh, kw)), b2=nrm((f2,)),
        bn3=bn(f2),
        w3=nrm((f3, f2, kh, kw)), b3=nrm((f3,)),
        ws=nrm((f3, in_c, 1, 1)), bs=nrm((f3,)),
        se_w1=nrm((cr, f3)), se_b1=nrm((cr,)),
        se_w2=nrm((f3, cr)), se_b2=nrm((f3,)),
    )


def prepare_kernel_params(tp, eps=1e-5):
    """Fold BN (eval mode) + conv biases, im2col-pack 3x3 weights, cast MXU weights to bf16."""
    bf16 = jnp.bfloat16

    def bn_fold(d):
        s = d["gamma"] / jnp.sqrt(d["var"] + eps)
        return s.reshape(-1, 1), (d["beta"] - d["mean"] * s).reshape(-1, 1)

    def im2col_w(w):      # (O, I, KH, KW) -> (O, KH*KW*I), tap-major (matches kernel stacking)
        o, i, a, b = w.shape
        return jnp.transpose(w, (0, 2, 3, 1)).reshape(o, a * b * i)

    kp = {}
    kp["bn1_s"], kp["bn1_b"] = bn_fold(tp["bn1"])
    bn2_s, bn2_b = bn_fold(tp["bn2"])
    bn3_s, bn3_b = bn_fold(tp["bn3"])
    # fold conv1/conv2 biases into the following BN shift (free prep-time change)
    kp["bn2_s"], kp["bn2_b"] = bn2_s, bn2_b + bn2_s * tp["b1"].reshape(-1, 1)
    kp["bn3_s"], kp["bn3_b"] = bn3_s, bn3_b + bn3_s * tp["b2"].reshape(-1, 1)

    kp["w1"] = tp["w1"][:, :, 0, 0].astype(bf16)
    kp["w2"] = im2col_w(tp["w2"]).astype(bf16)
    kp["w3"] = im2col_w(tp["w3"]).astype(bf16)
    kp["b3"] = tp["b3"].reshape(-1, 1)
    kp["ws"] = tp["ws"][:, :, 0, 0].astype(bf16)
    kp["bs"] = tp["bs"].reshape(-1, 1)
    kp["se_w1"] = tp["se_w1"]; kp["se_b1"] = tp["se_b1"].reshape(-1, 1)
    kp["se_w2"] = tp["se_w2"]; kp["se_b2"] = tp["se_b2"].reshape(-1, 1)
    return kp


# ------------------------- pure-JAX reference (self-check) -----------------------
def reference_forward(x, tp, eps=1e-5):
    hi = lax.Precision.HIGHEST

    def bn(v, d):
        s = d["gamma"] / jnp.sqrt(d["var"] + eps)
        return v * s[None, :, None, None] + (d["beta"] - d["mean"] * s)[None, :, None, None]

    def conv(v, w, b, pad):
        y = lax.conv_general_dilated(v, w, (1, 1), [(pad, pad), (pad, pad)],
                                     dimension_numbers=("NCHW", "OIHW", "NCHW"),
                                     precision=hi)
        return y + b[None, :, None, None]

    h = jax.nn.relu(bn(x, tp["bn1"]))
    h = conv(h, tp["w1"], tp["b1"], 0)
    h = jax.nn.relu(bn(h, tp["bn2"]))
    h = conv(h, tp["w2"], tp["b2"], 1)
    h = jax.nn.relu(bn(h, tp["bn3"]))
    h = conv(h, tp["w3"], tp["b3"], 1)
    pooled = h.mean(axis=(2, 3))
    z = jax.nn.relu(jnp.matmul(pooled, tp["se_w1"].T, precision=hi) + tp["se_b1"])
    g = jax.nn.sigmoid(jnp.matmul(z, tp["se_w2"].T, precision=hi) + tp["se_b2"])
    h = h * g[:, :, None, None]
    sc = conv(x, tp["ws"], tp["bs"], 0)
    return h + sc


if __name__ == "__main__":
    in_c, filters, ksize, r = 4, (8, 8, 8), (3, 3), 2
    N, H, W = 4, 16, 16        # default nb=2 -> grid=(2,): 2 images/step, 2 steps

    key = jax.random.PRNGKey(0)
    pkey, xkey = jax.random.split(key)
    tparams = init_torch_params(pkey, in_c, filters, ksize, r)
    kparams = prepare_kernel_params(tparams)
    x = jax.random.normal(xkey, (N, in_c, H, W), jnp.float32)

    fwd = jax.jit(lambda a: pre_conv_block(a, kparams))
    out = fwd(x)
    jax.block_until_ready(out)

    assert out.shape == (N, filters[2], H, W), out.shape
    assert bool(jnp.all(jnp.isfinite(out)))

    ref = reference_forward(x, tparams)
    # Tolerance sized for bf16 MXU operands (f32 accumulation); an all-f32 path
    # matches to ~1e-5.
    assert bool(jnp.allclose(out, ref, atol=2e-2, rtol=2e-2)), \
        float(jnp.max(jnp.abs(out - ref)))

    print("KERNEL_OK")
</pallas_src>

<mosaic_0001>
module attributes {stable_mosaic.version = 11 : i64} {
  func.func @_fused_preconv_kernel(%arg0: i32, %arg1: memref<1x4x512xf32, #tpu.memory_space<vmem>>, %arg2: memref<72x512xf32, #tpu.memory_space<vmem>>, %arg3: memref<72x512xf32, #tpu.memory_space<vmem>>, %arg4: memref<4x1xf32, #tpu.memory_space<vmem>>, %arg5: memref<4x1xf32, #tpu.memory_space<vmem>>, %arg6: memref<8x4xbf16, #tpu.memory_space<vmem>>, %arg7: memref<8x1xf32, #tpu.memory_space<vmem>>, %arg8: memref<8x1xf32, #tpu.memory_space<vmem>>, %arg9: memref<8x72xbf16, #tpu.memory_space<vmem>>, %arg10: memref<8x1xf32, #tpu.memory_space<vmem>>, %arg11: memref<8x1xf32, #tpu.memory_space<vmem>>, %arg12: memref<8x72xbf16, #tpu.memory_space<vmem>>, %arg13: memref<8x1xf32, #tpu.memory_space<vmem>>, %arg14: memref<8x4xbf16, #tpu.memory_space<vmem>>, %arg15: memref<8x1xf32, #tpu.memory_space<vmem>>, %arg16: memref<4x8xf32, #tpu.memory_space<vmem>>, %arg17: memref<4x1xf32, #tpu.memory_space<vmem>>, %arg18: memref<8x4xf32, #tpu.memory_space<vmem>>, %arg19: memref<8x1xf32, #tpu.memory_space<vmem>>, %arg20: memref<1x8x512xf32, #tpu.memory_space<vmem>>) attributes {dimension_semantics = [#tpu.dimension_semantics<parallel>], iteration_bounds = array<i64: 2>, scalar_prefetch = 0 : i64, scratch_operands = 0 : i64, tpu.core_type = #tpu.core_type<tc>, window_params = [{transform_indices = @transform_0, window_bounds = array<i64: 1, 4, 512>}, {pipeline_mode = #tpu.pipeline_mode<synchronous>, transform_indices = @transform_1, window_bounds = array<i64: 72, 512>}, {pipeline_mode = #tpu.pipeline_mode<synchronous>, transform_indices = @transform_2, window_bounds = array<i64: 72, 512>}, {pipeline_mode = #tpu.pipeline_mode<synchronous>, transform_indices = @transform_3, window_bounds = array<i64: 4, 1>}, {pipeline_mode = #tpu.pipeline_mode<synchronous>, transform_indices = @transform_4, window_bounds = array<i64: 4, 1>}, {pipeline_mode = #tpu.pipeline_mode<synchronous>, transform_indices = @transform_5, window_bounds = array<i64: 8, 4>}, {pipeline_mode = #tpu.pipeline_mode<synchronous>, transform_indices = @transform_6, window_bounds = array<i64: 8, 1>}, {pipeline_mode = #tpu.pipeline_mode<synchronous>, transform_indices = @transform_7, window_bounds = array<i64: 8, 1>}, {pipeline_mode = #tpu.pipeline_mode<synchronous>, transform_indices = @transform_8, window_bounds = array<i64: 8, 72>}, {pipeline_mode = #tpu.pipeline_mode<synchronous>, transform_indices = @transform_9, window_bounds = array<i64: 8, 1>}, {pipeline_mode = #tpu.pipeline_mode<synchronous>, transform_indices = @transform_10, window_bounds = array<i64: 8, 1>}, {pipeline_mode = #tpu.pipeline_mode<synchronous>, transform_indices = @transform_11, window_bounds = array<i64: 8, 72>}, {pipeline_mode = #tpu.pipeline_mode<synchronous>, transform_indices = @transform_12, window_bounds = array<i64: 8, 1>}, {pipeline_mode = #tpu.pipeline_mode<synchronous>, transform_indices = @transform_13, window_bounds = array<i64: 8, 4>}, {pipeline_mode = #tpu.pipeline_mode<synchronous>, transform_indices = @transform_14, window_bounds = array<i64: 8, 1>}, {pipeline_mode = #tpu.pipeline_mode<synchronous>, transform_indices = @transform_15, window_bounds = array<i64: 4, 8>}, {pipeline_mode = #tpu.pipeline_mode<synchronous>, transform_indices = @transform_16, window_bounds = array<i64: 4, 1>}, {pipeline_mode = #tpu.pipeline_mode<synchronous>, transform_indices = @transform_17, window_bounds = array<i64: 8, 4>}, {pipeline_mode = #tpu.pipeline_mode<synchronous>, transform_indices = @transform_18, window_bounds = array<i64: 8, 1>}, {transform_indices = @transform_19, window_bounds = array<i64: 1, 8, 512>}]} {
    %c0 = arith.constant 0 : index
    %c0_0 = arith.constant 0 : index
    %c0_1 = arith.constant 0 : index
    %0 = vector.load %arg1[%c0, %c0_0, %c0_1] : memref<1x4x512xf32, #tpu.memory_space<vmem>>, vector<1x4x512xf32>
    %1 = vector.shape_cast %0 : vector<1x4x512xf32> to vector<4x512xf32>
    %c0_2 = arith.constant 0 : index
    %c0_3 = arith.constant 0 : index
    %2 = vector.load %arg4[%c0_2, %c0_3] : memref<4x1xf32, #tpu.memory_space<vmem>>, vector<4x1xf32>
    %3 = vector.broadcast %2 : vector<4x1xf32> to vector<4x512xf32>
    %4 = arith.mulf %1, %3 : vector<4x512xf32>
    %c0_4 = arith.constant 0 : index
    %c0_5 = arith.constant 0 : index
    %5 = vector.load %arg5[%c0_4, %c0_5] : memref<4x1xf32, #tpu.memory_space<vmem>>, vector<4x1xf32>
    %6 = vector.broadcast %5 : vector<4x1xf32> to vector<4x512xf32>
    %7 = arith.addf %4, %6 : vector<4x512xf32>
    %cst = arith.constant 0.000000e+00 : f32
    %8 = vector.broadcast %cst : f32 to vector<4x512xf32>
    %9 = arith.maximumf %7, %8 : vector<4x512xf32>
    %c0_6 = arith.constant 0 : index
    %c0_7 = arith.constant 0 : index
    %10 = vector.load %arg6[%c0_6, %c0_7] : memref<8x4xbf16, #tpu.memory_space<vmem>>, vector<8x4xbf16>
    %11 = arith.truncf %9 : vector<4x512xf32> to vector<4x512xbf16>
    %cst_8 = arith.constant dense<0.000000e+00> : vector<8x512xf32>
    %12 = tpu.matmul %10, %11, %cst_8 {dimension_numbers = #tpu.dot_dimension_numbers<[1], [0], [0], [1], [0, 0, 1, 1], [], []>} : vector<8x4xbf16>, vector<4x512xbf16>, vector<8x512xf32> -> vector<8x512xf32>
    %c0_9 = arith.constant 0 : index
    %c0_10 = arith.constant 0 : index
    %13 = vector.load %arg7[%c0_9, %c0_10] : memref<8x1xf32, #tpu.memory_space<vmem>>, vector<8x1xf32>
    %14 = vector.broadcast %13 : vector<8x1xf32> to vector<8x512xf32>
    %15 = arith.mulf %12, %14 : vector<8x512xf32>
    %c0_11 = arith.constant 0 : index
    %c0_12 = arith.constant 0 : index
    %16 = vector.load %arg8[%c0_11, %c0_12] : memref<8x1xf32, #tpu.memory_space<vmem>>, vector<8x1xf32>
    %17 = vector.broadcast %16 : vector<8x1xf32> to vector<8x512xf32>
    %18 = arith.addf %15, %17 : vector<8x512xf32>
    %cst_13 = arith.constant 0.000000e+00 : f32
    %19 = vector.broadcast %cst_13 : f32 to vector<8x512xf32>
    %20 = arith.maximumf %18, %19 : vector<8x512xf32>
    %c17_i32 = arith.constant 17 : i32
    %21 = tpu.dynamic_rotate %20 by %c17_i32 dim 1 : vector<8x512xf32>, i32 -> vector<8x512xf32>
    %c16_i32 = arith.constant 16 : i32
    %22 = tpu.dynamic_rotate %20 by %c16_i32 dim 1 : vector<8x512xf32>, i32 -> vector<8x512xf32>
    %c15_i32 = arith.constant 15 : i32
    %23 = tpu.dynamic_rotate %20 by %c15_i32 dim 1 : vector<8x512xf32>, i32 -> vector<8x512xf32>
    %c1_i32 = arith.constant 1 : i32
    %24 = tpu.dynamic_rotate %20 by %c1_i32 dim 1 : vector<8x512xf32>, i32 -> vector<8x512xf32>
    %c511_i32 = arith.constant 511 : i32
    %25 = tpu.dynamic_rotate %20 by %c511_i32 dim 1 : vector<8x512xf32>, i32 -> vector<8x512xf32>
    %c497_i32 = arith.constant 497 : i32
    %26 = tpu.dynamic_rotate %20 by %c497_i32 dim 1 : vector<8x512xf32>, i32 -> vector<8x512xf32>
    %c496_i32 = arith.constant 496 : i32
    %27 = tpu.dynamic_rotate %20 by %c496_i32 dim 1 : vector<8x512xf32>, i32 -> vector<8x512xf32>
    %c495_i32 = arith.constant 495 : i32
    %28 = tpu.dynamic_rotate %20 by %c495_i32 dim 1 : vector<8x512xf32>, i32 -> vector<8x512xf32>
    %29 = tpu.concatenate %21, %22, %23, %24, %20, %25, %26, %27, %28 in 0 : vector<8x512xf32>, vector<8x512xf32>, vector<8x512xf32>, vector<8x512xf32>, vector<8x512xf32>, vector<8x512xf32>, vector<8x512xf32>, vector<8x512xf32>, vector<8x512xf32> -> vector<72x512xf32>
    %c0_14 = arith.constant 0 : index
    %c0_15 = arith.constant 0 : index
    %30 = vector.load %arg2[%c0_14, %c0_15] : memref<72x512xf32, #tpu.memory_space<vmem>>, vector<72x512xf32>
    %31 = arith.mulf %29, %30 : vector<72x512xf32>
    %c0_16 = arith.constant 0 : index
    %c0_17 = arith.constant 0 : index
    %32 = vector.load %arg9[%c0_16, %c0_17] : memref<8x72xbf16, #tpu.memory_space<vmem>>, vector<8x72xbf16>
    %33 = arith.truncf %31 : vector<72x512xf32> to vector<72x512xbf16>
    %cst_18 = arith.constant dense<0.000000e+00> : vector<8x512xf32>
    %34 = tpu.matmul %32, %33, %cst_18 {dimension_numbers = #tpu.dot_dimension_numbers<[1], [0], [0], [1], [0, 0, 1, 1], [], []>} : vector<8x72xbf16>, vector<72x512xbf16>, vector<8x512xf32> -> vector<8x512xf32>
    %c0_19 = arith.constant 0 : index
    %c0_20 = arith.constant 0 : index
    %35 = vector.load %arg10[%c0_19, %c0_20] : memref<8x1xf32, #tpu.memory_space<vmem>>, vector<8x1xf32>
    %36 = vector.broadcast %35 : vector<8x1xf32> to vector<8x512xf32>
    %37 = arith.mulf %34, %36 : vector<8x512xf32>
    %c0_21 = arith.constant 0 : index
    %c0_22 = arith.constant 0 : index
    %38 = vector.load %arg11[%c0_21, %c0_22] : memref<8x1xf32, #tpu.memory_space<vmem>>, vector<8x1xf32>
    %39 = vector.broadcast %38 : vector<8x1xf32> to vector<8x512xf32>
    %40 = arith.addf %37, %39 : vector<8x512xf32>
    %cst_23 = arith.constant 0.000000e+00 : f32
    %41 = vector.broadcast %cst_23 : f32 to vector<8x512xf32>
    %42 = arith.maximumf %40, %41 : vector<8x512xf32>
    %c17_i32_24 = arith.constant 17 : i32
    %43 = tpu.dynamic_rotate %42 by %c17_i32_24 dim 1 : vector<8x512xf32>, i32 -> vector<8x512xf32>
    %c16_i32_25 = arith.constant 16 : i32
    %44 = tpu.dynamic_rotate %42 by %c16_i32_25 dim 1 : vector<8x512xf32>, i32 -> vector<8x512xf32>
    %c15_i32_26 = arith.constant 15 : i32
    %45 = tpu.dynamic_rotate %42 by %c15_i32_26 dim 1 : vector<8x512xf32>, i32 -> vector<8x512xf32>
    %c1_i32_27 = arith.constant 1 : i32
    %46 = tpu.dynamic_rotate %42 by %c1_i32_27 dim 1 : vector<8x512xf32>, i32 -> vector<8x512xf32>
    %c511_i32_28 = arith.constant 511 : i32
    %47 = tpu.dynamic_rotate %42 by %c511_i32_28 dim 1 : vector<8x512xf32>, i32 -> vector<8x512xf32>
    %c497_i32_29 = arith.constant 497 : i32
    %48 = tpu.dynamic_rotate %42 by %c497_i32_29 dim 1 : vector<8x512xf32>, i32 -> vector<8x512xf32>
    %c496_i32_30 = arith.constant 496 : i32
    %49 = tpu.dynamic_rotate %42 by %c496_i32_30 dim 1 : vector<8x512xf32>, i32 -> vector<8x512xf32>
    %c495_i32_31 = arith.constant 495 : i32
    %50 = tpu.dynamic_rotate %42 by %c495_i32_31 dim 1 : vector<8x512xf32>, i32 -> vector<8x512xf32>
    %51 = tpu.concatenate %43, %44, %45, %46, %42, %47, %48, %49, %50 in 0 : vector<8x512xf32>, vector<8x512xf32>, vector<8x512xf32>, vector<8x512xf32>, vector<8x512xf32>, vector<8x512xf32>, vector<8x512xf32>, vector<8x512xf32>, vector<8x512xf32> -> vector<72x512xf32>
    %c0_32 = arith.constant 0 : index
    %c0_33 = arith.constant 0 : index
    %52 = vector.load %arg3[%c0_32, %c0_33] : memref<72x512xf32, #tpu.memory_space<vmem>>, vector<72x512xf32>
    %53 = arith.mulf %51, %52 : vector<72x512xf32>
    %c0_34 = arith.constant 0 : index
    %c0_35 = arith.constant 0 : index
    %54 = vector.load %arg12[%c0_34, %c0_35] : memref<8x72xbf16, #tpu.memory_space<vmem>>, vector<8x72xbf16>
    %55 = arith.truncf %53 : vector<72x512xf32> to vector<72x512xbf16>
    %cst_36 = arith.constant dense<0.000000e+00> : vector<8x512xf32>
    %56 = tpu.matmul %54, %55, %cst_36 {dimension_numbers = #tpu.dot_dimension_numbers<[1], [0], [0], [1], [0, 0, 1, 1], [], []>} : vector<8x72xbf16>, vector<72x512xbf16>, vector<8x512xf32> -> vector<8x512xf32>
    %c0_37 = arith.constant 0 : index
    %c0_38 = arith.constant 0 : index
    %57 = vector.load %arg13[%c0_37, %c0_38] : memref<8x1xf32, #tpu.memory_space<vmem>>, vector<8x1xf32>
    %58 = vector.broadcast %57 : vector<8x1xf32> to vector<8x512xf32>
    %59 = arith.addf %56, %58 : vector<8x512xf32>
    %c0_39 = arith.constant 0 : index
    %c0_40 = arith.constant 0 : index
    %60 = vector.load %arg14[%c0_39, %c0_40] : memref<8x4xbf16, #tpu.memory_space<vmem>>, vector<8x4xbf16>
    %61 = arith.truncf %1 : vector<4x512xf32> to vector<4x512xbf16>
    %cst_41 = arith.constant dense<0.000000e+00> : vector<8x512xf32>
    %62 = tpu.matmul %60, %61, %cst_41 {dimension_numbers = #tpu.dot_dimension_numbers<[1], [0], [0], [1], [0, 0, 1, 1], [], []>} : vector<8x4xbf16>, vector<4x512xbf16>, vector<8x512xf32> -> vector<8x512xf32>
    %c0_42 = arith.constant 0 : index
    %c0_43 = arith.constant 0 : index
    %63 = vector.load %arg15[%c0_42, %c0_43] : memref<8x1xf32, #tpu.memory_space<vmem>>, vector<8x1xf32>
    %64 = vector.broadcast %63 : vector<8x1xf32> to vector<8x512xf32>
    %65 = arith.addf %62, %64 : vector<8x512xf32>
    %66 = vector.extract_strided_slice %59 {offsets = [0, 0], sizes = [8, 256], strides = [1, 1]} : vector<8x512xf32> to vector<8x256xf32>
    %cst_44 = arith.constant dense<0.000000e+00> : vector<8xf32>
    %67 = vector.multi_reduction <add>, %66, %cst_44 [1] : vector<8x256xf32> to vector<8xf32>
    %68 = vector.shape_cast %67 : vector<8xf32> to vector<8x1xf32>
    %cst_45 = arith.constant 3.906250e-03 : f32
    %69 = vector.broadcast %cst_45 : f32 to vector<8x1xf32>
    %70 = arith.mulf %68, %69 : vector<8x1xf32>
    %c0_46 = arith.constant 0 : index
    %c0_47 = arith.constant 0 : index
    %71 = vector.load %arg16[%c0_46, %c0_47] : memref<4x8xf32, #tpu.memory_space<vmem>>, vector<4x8xf32>
    %cst_48 = arith.constant dense<0.000000e+00> : vector<4x1xf32>
    %72 = tpu.matmul %71, %70, %cst_48 {dimension_numbers = #tpu.dot_dimension_numbers<[1], [0], [0], [1], [0, 0, 1, 1], [], []>} : vector<4x8xf32>, vector<8x1xf32>, vector<4x1xf32> -> vector<4x1xf32>
    %c0_49 = arith.constant 0 : index
    %c0_50 = arith.constant 0 : index
    %73 = vector.load %arg17[%c0_49, %c0_50] : memref<4x1xf32, #tpu.memory_space<vmem>>, vector<4x1xf32>
    %74 = arith.addf %72, %73 : vector<4x1xf32>
    %cst_51 = arith.constant 0.000000e+00 : f32
    %75 = vector.broadcast %cst_51 : f32 to vector<4x1xf32>
    %76 = arith.maximumf %74, %75 : vector<4x1xf32>
    %c0_52 = arith.constant 0 : index
    %c0_53 = arith.constant 0 : index
    %77 = vector.load %arg18[%c0_52, %c0_53] : memref<8x4xf32, #tpu.memory_space<vmem>>, vector<8x4xf32>
    %cst_54 = arith.constant dense<0.000000e+00> : vector<8x1xf32>
    %78 = tpu.matmul %77, %76, %cst_54 {dimension_numbers = #tpu.dot_dimension_numbers<[1], [0], [0], [1], [0, 0, 1, 1], [], []>} : vector<8x4xf32>, vector<4x1xf32>, vector<8x1xf32> -> vector<8x1xf32>
    %c0_55 = arith.constant 0 : index
    %c0_56 = arith.constant 0 : index
    %79 = vector.load %arg19[%c0_55, %c0_56] : memref<8x1xf32, #tpu.memory_space<vmem>>, vector<8x1xf32>
    %80 = arith.addf %78, %79 : vector<8x1xf32>
    %81 = arith.negf %80 : vector<8x1xf32>
    %82 = math.exp %81 : vector<8x1xf32>
    %cst_57 = arith.constant 1.000000e+00 : f32
    %83 = vector.broadcast %cst_57 : f32 to vector<8x1xf32>
    %84 = arith.addf %83, %82 : vector<8x1xf32>
    %85 = arith.divf %83, %84 : vector<8x1xf32>
    %86 = vector.shape_cast %85 : vector<8x1xf32> to vector<8x1xf32>
    %87 = vector.broadcast %86 : vector<8x1xf32> to vector<8x256xf32>
    %88 = vector.extract_strided_slice %59 {offsets = [0, 256], sizes = [8, 256], strides = [1, 1]} : vector<8x512xf32> to vector<8x256xf32>
    %cst_58 = arith.constant dense<0.000000e+00> : vector<8xf32>
    %89 = vector.multi_reduction <add>, %88, %cst_58 [1] : vector<8x256xf32> to vector<8xf32>
    %90 = vector.shape_cast %89 : vector<8xf32> to vector<8x1xf32>
    %cst_59 = arith.constant 3.906250e-03 : f32
    %91 = vector.broadcast %cst_59 : f32 to vector<8x1xf32>
    %92 = arith.mulf %90, %91 : vector<8x1xf32>
    %c0_60 = arith.constant 0 : index
    %c0_61 = arith.constant 0 : index
    %93 = vector.load %arg16[%c0_60, %c0_61] : memref<4x8xf32, #tpu.memory_space<vmem>>, vector<4x8xf32>
    %cst_62 = arith.constant dense<0.000000e+00> : vector<4x1xf32>
    %94 = tpu.matmul %93, %92, %cst_62 {dimension_numbers = #tpu.dot_dimension_numbers<[1], [0], [0], [1], [0, 0, 1, 1], [], []>} : vector<4x8xf32>, vector<8x1xf32>, vector<4x1xf32> -> vector<4x1xf32>
    %c0_63 = arith.constant 0 : index
    %c0_64 = arith.constant 0 : index
    %95 = vector.load %arg17[%c0_63, %c0_64] : memref<4x1xf32, #tpu.memory_space<vmem>>, vector<4x1xf32>
    %96 = arith.addf %94, %95 : vector<4x1xf32>
    %cst_65 = arith.constant 0.000000e+00 : f32
    %97 = vector.broadcast %cst_65 : f32 to vector<4x1xf32>
    %98 = arith.maximumf %96, %97 : vector<4x1xf32>
    %c0_66 = arith.constant 0 : index
    %c0_67 = arith.constant 0 : index
    %99 = vector.load %arg18[%c0_66, %c0_67] : memref<8x4xf32, #tpu.memory_space<vmem>>, vector<8x4xf32>
    %cst_68 = arith.constant dense<0.000000e+00> : vector<8x1xf32>
    %100 = tpu.matmul %99, %98, %cst_68 {dimension_numbers = #tpu.dot_dimension_numbers<[1], [0], [0], [1], [0, 0, 1, 1], [], []>} : vector<8x4xf32>, vector<4x1xf32>, vector<8x1xf32> -> vector<8x1xf32>
    %c0_69 = arith.constant 0 : index
    %c0_70 = arith.constant 0 : index
    %101 = vector.load %arg19[%c0_69, %c0_70] : memref<8x1xf32, #tpu.memory_space<vmem>>, vector<8x1xf32>
    %102 = arith.addf %100, %101 : vector<8x1xf32>
    %103 = arith.negf %102 : vector<8x1xf32>
    %104 = math.exp %103 : vector<8x1xf32>
    %cst_71 = arith.constant 1.000000e+00 : f32
    %105 = vector.broadcast %cst_71 : f32 to vector<8x1xf32>
    %106 = arith.addf %105, %104 : vector<8x1xf32>
    %107 = arith.divf %105, %106 : vector<8x1xf32>
    %108 = vector.shape_cast %107 : vector<8x1xf32> to vector<8x1xf32>
    %109 = vector.broadcast %108 : vector<8x1xf32> to vector<8x256xf32>
    %110 = tpu.concatenate %87, %109 in 1 : vector<8x256xf32>, vector<8x256xf32> -> vector<8x512xf32>
    %111 = arith.mulf %59, %110 : vector<8x512xf32>
    %112 = arith.addf %111, %65 : vector<8x512xf32>
    %c0_72 = arith.constant 0 : index
    %c0_73 = arith.constant 0 : index
    %c0_74 = arith.constant 0 : index
    %113 = vector.load %arg20[%c0_72, %c0_73, %c0_74] : memref<1x8x512xf32, #tpu.memory_space<vmem>>, vector<1x8x512xf32>
    %114 = vector.shape_cast %113 : vector<1x8x512xf32> to vector<8x512xf32>
    %115 = vector.shape_cast %112 : vector<8x512xf32> to vector<1x8x512xf32>
    tpu.vector_store %arg20[%c0_72, %c0_73, %c0_74], %115 {strides = array<i32>} : memref<1x8x512xf32, #tpu.memory_space<vmem>>, vector<1x8x512xf32>,
    return
  }
  func.func @transform_0(%arg0: i32) -> (i32, i32, i32) {
    %c0_i32 = arith.constant 0 : i32
    %c0_i32_0 = arith.constant 0 : i32
    %c0_i32_1 = arith.constant 0 : i32
    return %arg0, %c0_i32, %c0_i32_0 : i32, i32, i32
  }
  func.func @transform_1(%arg0: i32) -> (i32, i32) {
    %c0_i32 = arith.constant 0 : i32
    %c0_i32_0 = arith.constant 0 : i32
    %c0_i32_1 = arith.constant 0 : i32
    return %c0_i32, %c0_i32_0 : i32, i32
  }
  func.func @transform_2(%arg0: i32) -> (i32, i32) {
    %c0_i32 = arith.constant 0 : i32
    %c0_i32_0 = arith.constant 0 : i32
    %c0_i32_1 = arith.constant 0 : i32
    return %c0_i32, %c0_i32_0 : i32, i32
  }
  func.func @transform_3(%arg0: i32) -> (i32, i32) {
    %c0_i32 = arith.constant 0 : i32
    %c0_i32_0 = arith.constant 0 : i32
    %c0_i32_1 = arith.constant 0 : i32
    return %c0_i32, %c0_i32_0 : i32, i32
  }
  func.func @transform_4(%arg0: i32) -> (i32, i32) {
    %c0_i32 = arith.constant 0 : i32
    %c0_i32_0 = arith.constant 0 : i32
    %c0_i32_1 = arith.constant 0 : i32
    return %c0_i32, %c0_i32_0 : i32, i32
  }
  func.func @transform_5(%arg0: i32) -> (i32, i32) {
    %c0_i32 = arith.constant 0 : i32
    %c0_i32_0 = arith.constant 0 : i32
    %c0_i32_1 = arith.constant 0 : i32
    return %c0_i32, %c0_i32_0 : i32, i32
  }
  func.func @transform_6(%arg0: i32) -> (i32, i32) {
    %c0_i32 = arith.constant 0 : i32
    %c0_i32_0 = arith.constant 0 : i32
    %c0_i32_1 = arith.constant 0 : i32
    return %c0_i32, %c0_i32_0 : i32, i32
  }
  func.func @transform_7(%arg0: i32) -> (i32, i32) {
    %c0_i32 = arith.constant 0 : i32
    %c0_i32_0 = arith.constant 0 : i32
    %c0_i32_1 = arith.constant 0 : i32
    return %c0_i32, %c0_i32_0 : i32, i32
  }
  func.func @transform_8(%arg0: i32) -> (i32, i32) {
    %c0_i32 = arith.constant 0 : i32
    %c0_i32_0 = arith.constant 0 : i32
    %c0_i32_1 = arith.constant 0 : i32
    return %c0_i32, %c0_i32_0 : i32, i32
  }
  func.func @transform_9(%arg0: i32) -> (i32, i32) {
    %c0_i32 = arith.constant 0 : i32
    %c0_i32_0 = arith.constant 0 : i32
    %c0_i32_1 = arith.constant 0 : i32
    return %c0_i32, %c0_i32_0 : i32, i32
  }
  func.func @transform_10(%arg0: i32) -> (i32, i32) {
    %c0_i32 = arith.constant 0 : i32
    %c0_i32_0 = arith.constant 0 : i32
    %c0_i32_1 = arith.constant 0 : i32
    return %c0_i32, %c0_i32_0 : i32, i32
  }
  func.func @transform_11(%arg0: i32) -> (i32, i32) {
    %c0_i32 = arith.constant 0 : i32
    %c0_i32_0 = arith.constant 0 : i32
    %c0_i32_1 = arith.constant 0 : i32
    return %c0_i32, %c0_i32_0 : i32, i32
  }
  func.func @transform_12(%arg0: i32) -> (i32, i32) {
    %c0_i32 = arith.constant 0 : i32
    %c0_i32_0 = arith.constant 0 : i32
    %c0_i32_1 = arith.constant 0 : i32
    return %c0_i32, %c0_i32_0 : i32, i32
  }
  func.func @transform_13(%arg0: i32) -> (i32, i32) {
    %c0_i32 = arith.constant 0 : i32
    %c0_i32_0 = arith.constant 0 : i32
    %c0_i32_1 = arith.constant 0 : i32
    return %c0_i32, %c0_i32_0 : i32, i32
  }
  func.func @transform_14(%arg0: i32) -> (i32, i32) {
    %c0_i32 = arith.constant 0 : i32
    %c0_i32_0 = arith.constant 0 : i32
    %c0_i32_1 = arith.constant 0 : i32
    return %c0_i32, %c0_i32_0 : i32, i32
  }
  func.func @transform_15(%arg0: i32) -> (i32, i32) {
    %c0_i32 = arith.constant 0 : i32
    %c0_i32_0 = arith.constant 0 : i32
    %c0_i32_1 = arith.constant 0 : i32
    return %c0_i32, %c0_i32_0 : i32, i32
  }
  func.func @transform_16(%arg0: i32) -> (i32, i32) {
    %c0_i32 = arith.constant 0 : i32
    %c0_i32_0 = arith.constant 0 : i32
    %c0_i32_1 = arith.constant 0 : i32
    return %c0_i32, %c0_i32_0 : i32, i32
  }
  func.func @transform_17(%arg0: i32) -> (i32, i32) {
    %c0_i32 = arith.constant 0 : i32
    %c0_i32_0 = arith.constant 0 : i32
    %c0_i32_1 = arith.constant 0 : i32
    return %c0_i32, %c0_i32_0 : i32, i32
  }
  func.func @transform_18(%arg0: i32) -> (i32, i32) {
    %c0_i32 = arith.constant 0 : i32
    %c0_i32_0 = arith.constant 0 : i32
    %c0_i32_1 = arith.constant 0 : i32
    return %c0_i32, %c0_i32_0 : i32, i32
  }
  func.func @transform_19(%arg0: i32) -> (i32, i32, i32) {
    %c0_i32 = arith.constant 0 : i32
    %c0_i32_0 = arith.constant 0 : i32
    %c0_i32_1 = arith.constant 0 : i32
    return %arg0, %c0_i32, %c0_i32_0 : i32, i32, i32
  }
}

</mosaic_0001>

<bundles_post_ra>
// kernel: _lambda_.1
= control target key start
LH: loop header
LB: loop body
LE: loop exit
PB: predicated region body
PF: predicated region fallthrough
CT: control target
= control target key end

     0   :  { %s2832_s0 = inlined_call_operand.vmem [shape: f32[2,4,512], index: 0, kind: input, shape index: {}]   ;;  %s2833_s1 = inlined_call_operand.vmem [shape: f32[72,512], index: 1, kind: input, shape index: {}, may-alias: {1,2}]   ;;  %s2834_s2 = inlined_call_operand.vmem [shape: f32[72,512], index: 2, kind: input, shape index: {}, may-alias: {1,2}]   ;;  %s2835_s3 = inlined_call_operand.vmem [shape: f32[4,1], index: 3, kind: input, shape index: {}]   ;;  %s2836_s4 = inlined_call_operand.vmem [shape: f32[4,1], index: 4, kind: input, shape index: {}]   ;;  %s2837_s5 = inlined_call_operand.vmem [shape: bf16[8,4], index: 5, kind: input, shape index: {}]   ;;  %s2838_s6 = inlined_call_operand.vmem [shape: f32[8,1], index: 6, kind: input, shape index: {}]   ;;  %s2839_s7 = inlined_call_operand.vmem [shape: f32[8,1], index: 7, kind: input, shape index: {}]   ;;  %s2840_s8 = inlined_call_operand.vmem [shape: bf16[8,72], index: 8, kind: input, shape index: {}]   ;;  %s2841_s9 = inlined_call_operand.vmem [shape: f32[8,1], index: 9, kind: input, shape index: {}]   ;;  %s2842_s10 = inlined_call_operand.vmem [shape: f32[8,1], index: 10, kind: input, shape index: {}]   ;;  %s2843_s11 = inlined_call_operand.vmem [shape: bf16[8,72], index: 11, kind: input, shape index: {}]   ;;  %s2844_s12 = inlined_call_operand.vmem [shape: f32[8,1], index: 12, kind: input, shape index: {}]   ;;  %s2845_s13 = inlined_call_operand.vmem [shape: bf16[8,4], index: 13, kind: input, shape index: {}]   ;;  %s2846_s14 = inlined_call_operand.vmem [shape: f32[8,1], index: 14, kind: input, shape index: {}]   ;;  %s2847_s15 = inlined_call_operand.vmem [shape: f32[4,8], index: 15, kind: input, shape index: {}]   ;;  %s2848_s16 = inlined_call_operand.vmem [shape: f32[4,1], index: 16, kind: input, shape index: {}]   ;;  %s2849_s17 = inlined_call_operand.vmem [shape: f32[8,4], index: 17, kind: input, shape index: {}]   ;;  %s2850_s18 = inlined_call_operand.vmem [shape: f32[8,1], index: 18, kind: input, shape index: {}]   ;;  %s2851_s19 = inlined_call_operand.vmem [shape: f32[2,8,512], index: 19, kind: output, shape index: {}]  }
   0x1   :  { %2864 = sst [smem:[#allocation2_spill]] %s2832_s0  ;;  %s2115_s0 = smov 0  }
   0x2   :  { %2865 = sst [smem:[#allocation3_spill]] %s2833_s1 }
   0x3   :  { %2866 = sst [smem:[#allocation4_spill]] %s2834_s2 }
   0x4   :  { %2867 = sst [smem:[#allocation5_spill]] %s2835_s3 }
   0x5 LB: > { %s1896_s30 = sadd.s32 4294967295, %s2001_s0   ;;  %p1900_p0 = scmp.ge.s32.totalorder %s2001_s0, 1  ;;  %s2001_s0 = sphi %s2115_s0, %s29_s0  }
   0x6   : > { %p537_p1 = scmp.lt.s32.totalorder %s2001_s0, 3 }
   0x8   : > { %p538_p2 = pnand %p1900_p0, %p537_p1 }
   0x9   : > { %s2868_s1 = sld [smem:[#allocation5_spill]] (!%p538_p2)  ;;  %v2003_v1 = vmov (!%p538_p2), 0   ;;  %v621_v2 = vld [vmem:[%s2836_s4] sm:$0xf] (!%p538_p2)  ;;  %p593_p3 = scmp.lt.s32.totalorder (!%p538_p2), %s1896_s30, 1  ;;  %v614_v7 = vlaneseq (!%p538_p2)  ;;  %vm653_vm0 = vcmask (!%p538_p2), 1041408  }
   0xa   : > { %541 = sbr.rel (%p538_p2) target bundleno = 1922 (0x782), region = 96  ;;  %1981 = vset.pattern.permute.xlu0 (!%p538_p2), %v2003_v1  ;;  %698 = vmatprep.mubr.bf16.mxu0 (!%p538_p2), %v2003_v1  ;;  %v748_v3 = vld [vmem:[%s2838_s6] sm:$0xff] (!%p538_p2)  ;;  %v2004_v5 = vmov (!%p538_p2), 839922192   ;;  %s2869_s29 = sld [smem:[#allocation2_spill]] (!%p538_p2)  ;;  %vm649_vm1 = vcmask (!%p538_p2), 31744  }
   0xb   : > { %739 = vmatprep.mubr.bf16.mxu1 (!%p538_p2), %v2003_v1  ;;  %1982 = vset.pattern.permute.xlu1 (!%p538_p2), %v2003_v1  ;;  %v758_v4 = vld [vmem:[%s2839_s7] sm:$0xff] (!%p538_p2)  ;;  %v612_v6 = vunpack.c.l.s4 (!%p538_p2), %v2004_v5  ;;  %v615_v9 = vshrl.u32 (!%p538_p2), %v614_v7, 7  ;;  %s2862_s22 = smov (!%p538_p2), 127   ;;  %s2006_s2 = smov (!%p538_p2), 17   ;;  %v2250_v60 = vand.u32 (!%p538_p2), 127, %v614_v7  ;;  %vm975_vm10 = vcmask (!%p538_p2), 1043456  }
   0xc   : > { %751 = vperm.xlu1 (!%p538_p2), %1982, %v748_v3   ;;  %v638_v31 = vld [vmem:[%s2837_s5] sm:$0xf] (!%p538_p2)  ;;  %s2860_s23 = smov (!%p538_p2), 113   ;;  %s2008_s24 = smov (!%p538_p2), 16   ;;  %vm971_vm11 = vcmask (!%p538_p2), 588800   ;;  %vm2014_vm12 = vmmov (!%p538_p2), 0  }
   0xd   : > { %v613_v8 = vunpack.c.0.s8 (!%p538_p2), %v612_v6  ;;  %s2856_s25 = smov (!%p538_p2), 112   ;;  %s2858_s3 = smov (!%p538_p2), 15   ;;  %v1070_v54 = vld [vmem:[%s2841_s9] sm:$0xff] (!%p538_p2)  ;;  %vm782_vm2 = vcmp.lt.s32.totalorder (!%p538_p2), %v2250_v60, 17  ;;  %vm795_vm3 = vcmp.lt.s32.totalorder (!%p538_p2), %v2250_v60, 16  ;;  %vm808_vm4 = vcmp.lt.s32.totalorder (!%p538_p2), %v2250_v60, 15 }
   0xe   : > { %s2854_s27 = smov (!%p538_p2), 111   ;;  %v1080_v55 = vld [vmem:[%s2842_s10] sm:$0xff] (!%p538_p2)  ;;  %s2870_s21 = sld [smem:[#allocation3_spill]] (!%p538_p2)  ;;  %vm821_vm5 = vcmp.lt.s32.totalorder (!%p538_p2), %v2250_v60, 1  ;;  %vm834_vm6 = vcmp.lt.s32.totalorder (!%p538_p2), %v2250_v60, 127  ;;  %vm847_vm7 = vcmp.lt.s32.totalorder (!%p538_p2), %v2250_v60, 113 }
   0xf   : > { %v606_v0 = vld [vmem:[%s2868_s1] sm:$0xf] (!%p538_p2)  ;;  %v616_v10 = vsub.s32 (!%p538_p2), %v613_v8, %v615_v9  ;;  %vm860_vm8 = vcmp.lt.s32.totalorder (!%p538_p2), %v2250_v60, 112  ;;  %vm873_vm9 = vcmp.lt.s32.totalorder (!%p538_p2), %v2250_v60, 111  ;;  %s2872_s1 = smov (!%p538_p2), 113   ;;  %s2874_s28 = smov (!%p538_p2), 112  }
  0x10   : > { %609 = vperm.xlu0 (!%p538_p2), %1981, %v606_v0   ;;  %761 = vperm.xlu1 (!%p538_p2), %1982, %v758_v4   ;;  %vm1506_vm13 = vcmask (!%p538_p2), 64512  }
  0x11   : > { %s2878_s30 = smov (!%p593_p3, %s1896_s30), 1 }
  0x12   : > { %s1931_s26 = sshll.u32 %s2878_s30, 4 }
  0x13   : > { %s2146_s20 = scalar_lea.vmem %s2869_s29, %s1931_s26  ;;  %s2011_s26 = smov 1  }
  0x14   : > { %624 = vperm.xlu0 %1981, %v621_v2   ;;  %v2149_v13 = vld [vmem:[%s2146_s20] sm:$0xff]  ;;  %v2152_v14 = vld [vmem:[%s2146_s20 + $0x8] sm:$0xff]  ;;  %s2875_s29 = smov 111  }
  0x15   : > { %v879_v2 = vld [vmem:[%s2870_s21 + $0x8] sm:$0xff] }
  0x16   : > { %v883_v4 = vld [vmem:[%s2870_s21 + $0x28] sm:$0xff] }
  0x8b   : > { %v752_v32 = vpop.permute.xlu1 %751 }
  0x8f   : > { %v610_v11 = vpop.permute.xlu0 %609  ;;  %v762_v33 = vpop.permute.xlu1 %761 }
  0x90   : > { %v617_v12 = vrot.slane %v610_v11, %v616_v10 }
  0x92   : > { %v619_v16 = vmul.f32 %v617_v12, %v2149_v13  ;;  %v620_v17 = vmul.f32 %v617_v12, %v2152_v14 }
  0x93   : > { %v625_v15 = vpop.permute.xlu0 %624 }
  0x94   : > { %v632_v18 = vrot.slane %v625_v15, %v616_v10  ;;  %v884_v15 = vld [vmem:[%s2870_s21 + $0x30] sm:$0xff] }
  0x96   : > { %v634_v19 = vadd.f32 %v632_v18, %v619_v16  ;;  %v635_v20 = vadd.f32 %v632_v18, %v620_v17  ;;  %v878_v17 = vld [vmem:[%s2870_s21] sm:$0xff]  ;;  %v881_v18 = vld [vmem:[%s2870_s21 + $0x18] sm:$0xff] }
  0x98   : > { %v636_v21 = vmax.f32 %v634_v19, 0.0  ;;  %v637_v22 = vmax.f32 %v635_v20, 0.0 }
  0x9a   : > { %v641_v23 = vcombine.high %v636_v21, %v636_v21  ;;  %v642_v24 = vcombine.high %v637_v22, %v637_v22  ;;  %v645_v25 = vpack.c.bf16 %v636_v21, %v636_v21  ;;  %v647_v26 = vpack.c.bf16 %v637_v22, %v637_v22  ;;  %v882_v21 = vld [vmem:[%s2870_s21 + $0x20] sm:$0xff]  ;;  %v885_v22 = vld [vmem:[%s2870_s21 + $0x38] sm:$0xff] }
  0x9c   : > { %v646_v27 = vpack.c.bf16 %v641_v23, %v641_v23  ;;  %v648_v28 = vpack.c.bf16 %v642_v24, %v642_v24  ;;  %v655_v29 = vsel %vm653_vm0, %v645_v25, 0  ;;  %v661_v30 = vsel %vm653_vm0, %v647_v26, 0  ;;  %v880_v23 = vld [vmem:[%s2870_s21 + $0x10] sm:$0xff] }
  0x9e   : > { %1905 = vmatprep.subr.msk.bf16.mxu0 %vm653_vm0, %v646_v27  ;;  %1907 = vmatprep.subr.msk.bf16.mxu1 %vm653_vm0, %v648_v28 }
  0x9f   : > { %667 = vmatpush1.bf16.msra.mxu0 %v655_v29  ;;  %708 = vmatpush1.bf16.msra.mxu1 %v661_v30 }
  0xa2   : > { %1906 = vmatmul.mubr.msk.bf16.vlgmr.msra.gmra.mrb[0].mxu0 %vm649_vm1, %v638_v31  ;;  %1908 = vmatmul.mubr.msk.bf16.vlgmr.msra.gmra.mrb[0].mxu1 %vm649_vm1, %v638_v31 }
  0xa3   : > { %1020 = vmatprep.mubr.bf16.mxu0 %v2003_v1  ;;  %1061 = vmatprep.mubr.bf16.mxu1 %v2003_v1 }
 0x175   : > { %v700_v34 = vpop.f32.mrb[0].mxu0  ;;  %v741_v35 = vpop.f32.mrb[0].mxu1 }
 0x176   : > { %v754_v36 = vmul.f32 %v752_v32, %v700_v34  ;;  %v756_v37 = vmul.f32 %v752_v32, %v741_v35  ;;  %v702_v38 = vpop.f32.mrb[1].mxu0  ;;  %v743_v39 = vpop.f32.mrb[1].mxu1 }
 0x177   : > { %v704_v40 = vpop.f32.mrb[2].mxu0  ;;  %v745_v41 = vpop.f32.mrb[2].mxu1  ;;  %v755_v48 = vmul.f32 %v752_v32, %v702_v38  ;;  %v757_v51 = vmul.f32 %v752_v32, %v743_v39 }
 0x178   : > { %v764_v42 = vadd.f32 %v762_v33, %v754_v36  ;;  %v766_v43 = vadd.f32 %v762_v33, %v756_v37  ;;  %v705_v44 = vpop.f32.mrb[3].mxu0  ;;  %v746_v45 = vpop.f32.mrb[3].mxu1  ;;  %v887_v40 = vld [vmem:[%s2870_s21 + $0x48] sm:$0xff] }
 0x179   : > { %v765_v49 = vadd.f32 %v762_v33, %v755_v48  ;;  %v767_v52 = vadd.f32 %v762_v33, %v757_v51 }
 0x17a   : > { %v2167_v46 = vmax.f32 %v764_v42, 0.0  ;;  %v2169_v47 = vmax.f32 %v766_v43, 0.0  ;;  %v891_v42 = vld [vmem:[%s2870_s21 + $0x68] sm:$0xff] }
 0x17b   : > { %v2183_v50 = vmax.f32 %v765_v49, 0.0  ;;  %v2193_v53 = vmax.f32 %v767_v52, 0.0 }
 0x17c   : > { %830 = vrot.lane.b32.xlu1 %v2169_v47, %s2862_s22  ;;  %772 = vrot.lane.b32.xlu0 %v2167_v46, %s2006_s2 }
 0x180   : > { %843 = vrot.lane.b32.xlu1 %v2169_v47, %s2860_s23  ;;  %787 = vrot.lane.b32.xlu0 %v2167_v46, %s2008_s24 }
 0x184   : > { %856 = vrot.lane.b32.xlu1 %v2169_v47, %s2856_s25  ;;  %776 = vrot.lane.b32.xlu0 %v2169_v47, %s2006_s2 }
 0x188   : > { %791 = vrot.lane.b32.xlu0 %v2169_v47, %s2008_s24  ;;  %774 = vrot.lane.b32.xlu1 %v2183_v50, %s2006_s2 }
 0x18c   : > { %800 = vrot.lane.b32.xlu0 %v2167_v46, %s2858_s3  ;;  %789 = vrot.lane.b32.xlu1 %v2183_v50, %s2008_s24 }
 0x190   : > { %813 = vrot.lane.b32.xlu0 %v2167_v46, %s2011_s26  ;;  %778 = vrot.lane.b32.xlu1 %v2193_v53, %s2006_s2 }
 0x194   : > { %804 = vrot.lane.b32.xlu0 %v2169_v47, %s2858_s3  ;;  %793 = vrot.lane.b32.xlu1 %v2193_v53, %s2008_s24 }
 0x198   : > { %817 = vrot.lane.b32.xlu0 %v2169_v47, %s2011_s26  ;;  %802 = vrot.lane.b32.xlu1 %v2183_v50, %s2858_s3 }
 0x19c   : > { %826 = vrot.lane.b32.xlu0 %v2167_v46, %s2862_s22  ;;  %815 = vrot.lane.b32.xlu1 %v2183_v50, %s2011_s26 }
 0x1a0   : > { %839 = vrot.lane.b32.xlu0 %v2167_v46, %s2860_s23  ;;  %806 = vrot.lane.b32.xlu1 %v2193_v53, %s2858_s3  ;;  %s2871_s3 = smov 127  }
 0x1a4   : > { %852 = vrot.lane.b32.xlu0 %v2167_v46, %s2856_s25  ;;  %819 = vrot.lane.b32.xlu1 %v2193_v53, %s2011_s26 }
 0x1a8   : > { %865 = vrot.lane.b32.xlu0 %v2167_v46, %s2854_s27  ;;  %832 = vrot.lane.b32.xlu1 %v2193_v53, %s2862_s22 }
 0x1ac   : > { %828 = vrot.lane.b32.xlu0 %v2183_v50, %s2862_s22  ;;  %845 = vrot.lane.b32.xlu1 %v2193_v53, %s2860_s23  ;;  %s2876_s22 = sld [smem:[#allocation4_spill]] }
 0x1b0   : > { %841 = vrot.lane.b32.xlu0 %v2183_v50, %s2860_s23  ;;  %858 = vrot.lane.b32.xlu1 %v2193_v53, %s2856_s25 }
 0x1b4   : > { %854 = vrot.lane.b32.xlu0 %v2183_v50, %s2856_s25  ;;  %867 = vrot.lane.b32.xlu1 %v2183_v50, %s2854_s27  ;;  %s2873_s25 = smov 15  }
 0x1b8   : > { %869 = vrot.lane.b32.xlu0 %v2169_v47, %s2854_s27  ;;  %871 = vrot.lane.b32.xlu1 %v2193_v53, %s2854_s27 }
 0x1bc   : > { %1073 = vperm.xlu0 %1981, %v1070_v54   ;;  %1083 = vperm.xlu1 %1982, %v1080_v55   ;;  %v892_v55 = vld [vmem:[%s2870_s21 + $0x70] sm:$0xff] }
 0x1ee   : > { %v2245_v56 = vpop.permute.xlu1 %830  ;;  %v773_v57 = vpop.permute.xlu0 %772 }
 0x1f2   : > { %v2247_v58 = vpop.permute.xlu1 %843  ;;  %v788_v59 = vpop.permute.xlu0 %787 }
 0x1f6   : > { %v2252_v61 = vpop.permute.xlu1 %856  ;;  %v777_v62 = vpop.permute.xlu0 %776 }
 0x1fa   : > { %v792_v63 = vpop.permute.xlu0 %791  ;;  %v775_v0 = vpop.permute.xlu1 %774 }
 0x1fb   : > { %v785_v3 = vsel %vm782_vm2, %v773_v57, %v775_v0  ;;  %v784_v24 = vsel %vm782_vm2, %v775_v0, %v777_v62 }
 0x1fc   : > { %v915_v8 = vmul.f32 %v879_v2, %v785_v3  ;;  %v916_v34 = vmul.f32 %v880_v23, %v784_v24  ;;  %v890_v2 = vld [vmem:[%s2870_s21 + $0x60] sm:$0xff]  ;;  %v893_v3 = vld [vmem:[%s2870_s21 + $0x78] sm:$0xff] }
 0x1fe   : > { %v801_v5 = vpop.permute.xlu0 %800  ;;  %v790_v6 = vpop.permute.xlu1 %789 }
 0x1ff   : > { %v798_v7 = vsel %vm795_vm3, %v788_v59, %v790_v6  ;;  %v797_v16 = vsel %vm795_vm3, %v790_v6, %v792_v63 }
 0x200   : > { %v919_v9 = vmul.f32 %v883_v4, %v798_v7  ;;  %v920_v27 = vmul.f32 %v884_v15, %v797_v16  ;;  %v888_v4 = vld [vmem:[%s2870_s21 + $0x50] sm:$0xff] }
 0x202   : > { %v814_v10 = vpop.permute.xlu0 %813  ;;  %v779_v11 = vpop.permute.xlu1 %778  ;;  %v952_v12 = vpack.c.bf16 %v919_v9, %v915_v8  ;;  %v953_v39 = vpack.c.bf16 %v920_v27, %v916_v34  ;;  %v898_v34 = vld [vmem:[%s2870_s21 + $0xa0] sm:$0xff] }
 0x203   : > { %v783_v19 = vsel %vm782_vm2, %v777_v62, %v779_v11  ;;  %v786_v20 = vsel %vm782_vm2, %v779_v11, %v773_v57  ;;  %v889_v62 = vld [vmem:[%s2870_s21 + $0x58] sm:$0xff] }
 0x204   : > { %988 = vmatprep.subr.bf16.mxu0 %v952_v12  ;;  %v914_v30 = vmul.f32 %v878_v17, %v786_v20  ;;  %v917_v31 = vmul.f32 %v881_v18, %v783_v19  ;;  %v896_v18 = vld [vmem:[%s2870_s21 + $0x90] sm:$0xff] }
 0x205   : > { %v900_v20 = vld [vmem:[%s2870_s21 + $0xb0] sm:$0xff]  ;;  %v932_v27 = vmul.f32 %v896_v18, %v2169_v47  ;;  %v895_v47 = vld [vmem:[%s2870_s21 + $0x88] sm:$0xff] }
 0x206   : > { %v805_v25 = vpop.permute.xlu0 %804  ;;  %v794_v26 = vpop.permute.xlu1 %793 }
 0x207   : > { %v796_v28 = vsel %vm795_vm3, %v792_v63, %v794_v26  ;;  %v799_v29 = vsel %vm795_vm3, %v794_v26, %v788_v59  ;;  %v886_v59 = vld [vmem:[%s2870_s21 + $0x40] sm:$0xff] }
 0x208   : > { %v918_v32 = vmul.f32 %v882_v21, %v799_v29  ;;  %v921_v33 = vmul.f32 %v885_v22, %v796_v28  ;;  %v901_v21 = vld [vmem:[%s2870_s21 + $0xb8] sm:$0xff] }
 0x20a   : > { %v951_v35 = vpack.c.bf16 %v918_v32, %v914_v30  ;;  %v818_v36 = vpop.permute.xlu0 %817  ;;  %v803_v37 = vpop.permute.xlu1 %802  ;;  %v954_v38 = vpack.c.bf16 %v921_v33, %v917_v31  ;;  %v894_v32 = vld [vmem:[%s2870_s21 + $0x80] sm:$0xff] }
 0x20b   : > { %v811_v41 = vsel %vm808_vm4, %v801_v5, %v803_v37  ;;  %v810_v6 = vsel %vm808_vm4, %v803_v37, %v805_v25 }
 0x20c   : > { %989 = vmatpush1.bf16.msra.mxu0 %v951_v35  ;;  %1029 = vmatprep.subr.bf16.mxu1 %v954_v38  ;;  %v923_v48 = vmul.f32 %v887_v40, %v811_v41  ;;  %v924_v19 = vmul.f32 %v888_v4, %v810_v6  ;;  %v899_v35 = vld [vmem:[%s2870_s21 + $0xa8] sm:$0xff] }
 0x20d   : > { %1030 = vmatpush1.bf16.msra.mxu1 %v953_v39 }
 0x20e   : > { %v827_v43 = vpop.permute.xlu0 %826  ;;  %v816_v44 = vpop.permute.xlu1 %815 }
 0x20f   : > { %v824_v45 = vsel %vm821_vm5, %v814_v10, %v816_v44  ;;  %v823_v57 = vsel %vm821_vm5, %v816_v44, %v818_v36 }
 0x210   : > { %v927_v49 = vmul.f32 %v891_v42, %v824_v45  ;;  %v928_v9 = vmul.f32 %v892_v55, %v823_v57  ;;  %v931_v42 = vmul.f32 %v895_v47, %v2183_v50 }
 0x212   : > { %v2308_v51 = vpop.permute.xlu0 %839  ;;  %v807_v52 = vpop.permute.xlu1 %806  ;;  %v956_v54 = vpack.c.bf16 %v927_v49, %v923_v48  ;;  %v957_v26 = vpack.c.bf16 %v928_v9, %v924_v19  ;;  %v904_v48 = vld [vmem:[%s2870_s21 + $0xd0] sm:$0xff] }
 0x213   : > { %v809_v63 = vsel %vm808_vm4, %v805_v25, %v807_v52  ;;  %v812_v0 = vsel %vm808_vm4, %v807_v52, %v801_v5 }
 0x214   : > { %990 = vmatprep.subr.bf16.mxu0 %v956_v54  ;;  %v922_v12 = vmul.f32 %v886_v59, %v812_v0  ;;  %v925_v15 = vmul.f32 %v889_v62, %v809_v63 }
 0x216   : > { %v2336_v7 = vpop.permute.xlu0 %852  ;;  %v820_v8 = vpop.permute.xlu1 %819 }
 0x217   : > { %v822_v5 = vsel %vm821_vm5, %v818_v36, %v820_v8  ;;  %v825_v11 = vsel %vm821_vm5, %v820_v8, %v814_v10  ;;  %v897_v10 = vld [vmem:[%s2870_s21 + $0x98] sm:$0xff] }
 0x218   : > { %v926_v16 = vmul.f32 %v890_v2, %v825_v11  ;;  %v929_v17 = vmul.f32 %v893_v3, %v822_v5  ;;  %v933_v33 = vmul.f32 %v897_v10, %v2193_v53  ;;  %v930_v53 = vmul.f32 %v894_v32, %v2167_v46  ;;  %v905_v46 = vld [vmem:[%s2870_s21 + $0xd8] sm:$0xff]  ;;  %v902_v2 = vld [vmem:[%s2870_s21 + $0xc0] sm:$0xff]  ;;  %v903_v3 = vld [vmem:[%s2870_s21 + $0xc8] sm:$0xff] }
 0x219   : > { %v906_v5 = vld [vmem:[%s2870_s21 + $0xe0] sm:$0xff]  ;;  %v907_v11 = vld [vmem:[%s2870_s21 + $0xe8] sm:$0xff] }
 0x21a   : > { %v955_v22 = vpack.c.bf16 %v926_v16, %v922_v12  ;;  %v2355_v23 = vpop.permute.xlu0 %865  ;;  %v833_v24 = vpop.permute.xlu1 %832  ;;  %v958_v25 = vpack.c.bf16 %v929_v17, %v925_v15 }
 0x21b   : > { %v835_v28 = vsel %vm834_vm6, %v2245_v56, %v833_v24  ;;  %v838_v29 = vsel %vm834_vm6, %v833_v24, %v827_v43 }
 0x21c   : > { %v936_v30 = vmul.f32 %v900_v20, %v835_v28  ;;  %v937_v31 = vmul.f32 %v901_v21, %v838_v29  ;;  %991 = vmatpush1.bf16.msra.mxu0 %v955_v22  ;;  %1031 = vmatprep.subr.bf16.mxu1 %v958_v25  ;;  %v911_v25 = vld [vmem:[%s2870_s21 + $0x108] sm:$0xff] }
 0x21d   : > { %1032 = vmatpush1.bf16.msra.mxu1 %v957_v26 }
 0x21e   : > { %v961_v36 = vpack.c.bf16 %v936_v30, %v932_v27  ;;  %v829_v37 = vpop.permute.xlu0 %828  ;;  %v846_v38 = vpop.permute.xlu1 %845  ;;  %v962_v39 = vpack.c.bf16 %v937_v31, %v933_v33 }
 0x21f   : > { %v836_v40 = vsel %vm834_vm6, %v829_v37, %v2245_v56  ;;  %v837_v41 = vsel %vm834_vm6, %v827_v43, %v829_v37  ;;  %v848_v49 = vsel %vm847_vm7, %v2247_v58, %v846_v38  ;;  %v851_v50 = vsel %vm847_vm7, %v846_v38, %v2308_v51  ;;  %v908_v56 = vld [vmem:[%s2870_s21 + $0xf0] sm:$0xff]  ;;  %v909_v43 = vld [vmem:[%s2870_s21 + $0xf8] sm:$0xff] }
 0x220   : > { %v934_v44 = vmul.f32 %v898_v34, %v837_v41  ;;  %v935_v45 = vmul.f32 %v899_v35, %v836_v40  ;;  %1033 = vmatprep.subr.bf16.mxu1 %v962_v39  ;;  %v940_v59 = vmul.f32 %v904_v48, %v848_v49  ;;  %v941_v0 = vmul.f32 %v905_v46, %v851_v50 }
 0x221   : > { %1034 = vmatpush1.bf16.msra.mxu1 %v961_v36 }
 0x222   : > { %v959_v52 = vpack.c.bf16 %v934_v44, %v930_v53  ;;  %v842_v54 = vpop.permute.xlu0 %841  ;;  %v859_v55 = vpop.permute.xlu1 %858  ;;  %v960_v57 = vpack.c.bf16 %v935_v45, %v931_v42 }
 0x223   : > { %v861_v62 = vsel %vm860_vm8, %v2252_v61, %v859_v55  ;;  %v864_v63 = vsel %vm860_vm8, %v859_v55, %v2336_v7  ;;  %v850_v4 = vsel %vm847_vm7, %v2308_v51, %v842_v54  ;;  %v849_v9 = vsel %vm847_vm7, %v842_v54, %v2247_v58  ;;  %v910_v51 = vld [vmem:[%s2870_s21 + $0x100] sm:$0xff] }
 0x224   : > { %v944_v6 = vmul.f32 %v908_v56, %v861_v62  ;;  %v945_v8 = vmul.f32 %v909_v43, %v864_v63  ;;  %992 = vmatprep.subr.bf16.mxu0 %v960_v57  ;;  %v938_v18 = vmul.f32 %v902_v2, %v850_v4  ;;  %v939_v21 = vmul.f32 %v903_v3, %v849_v9 }
 0x225   : > { %993 = vmatpush1.bf16.msra.mxu0 %v959_v52 }
 0x226   : > { %v965_v12 = vpack.c.bf16 %v944_v6, %v940_v59  ;;  %v855_v15 = vpop.permute.xlu0 %854  ;;  %v868_v16 = vpop.permute.xlu1 %867  ;;  %v966_v17 = vpack.c.bf16 %v945_v8, %v941_v0  ;;  %v1283_v6 = vld [vmem:[%s2844_s12] sm:$0xff] }
 0x227   : > { %v862_v58 = vsel %vm860_vm8, %v855_v15, %v2252_v61  ;;  %v863_v19 = vsel %vm860_vm8, %v2336_v7, %v855_v15  ;;  %v876_v20 = vsel %vm873_vm9, %v2355_v23, %v868_v16  ;;  %v912_v61 = vld [vmem:[%s2870_s21 + $0x110] sm:$0xff]  ;;  %v913_v7 = vld [vmem:[%s2870_s21 + $0x118] sm:$0xff] }
 0x228   : > { %v942_v10 = vmul.f32 %v906_v5, %v863_v19  ;;  %v943_v22 = vmul.f32 %v907_v11, %v862_v58  ;;  %v946_v24 = vmul.f32 %v910_v51, %v876_v20  ;;  %1035 = vmatprep.subr.bf16.mxu1 %v966_v17 }
 0x229   : > { %1036 = vmatpush1.bf16.msra.mxu1 %v965_v12 }
 0x22a   : > { %v963_v26 = vpack.c.bf16 %v942_v10, %v938_v18  ;;  %v870_v27 = vpop.permute.xlu0 %869  ;;  %v872_v28 = vpop.permute.xlu1 %871  ;;  %v964_v29 = vpack.c.bf16 %v943_v22, %v939_v21  ;;  %v967_v33 = vpack.c.bf16 %v946_v24, %v946_v24  ;;  %v1191_v10 = vld [vmem:[%s2876_s22 + $0x8] sm:$0xff] }
 0x22b   : > { %v875_v30 = vsel %vm873_vm9, %v868_v16, %v870_v27  ;;  %v874_v31 = vsel %vm873_vm9, %v870_v27, %v872_v28  ;;  %v877_v32 = vsel %vm873_vm9, %v872_v28, %v2355_v23  ;;  %v950_v23 = vld [vmem:[%s2840_s8] sm:$0xf]  ;;  %v1195_v24 = vld [vmem:[%s2876_s22 + $0x28] sm:$0xff] }
 0x22c   : > { %v947_v47 = vmul.f32 %v911_v25, %v875_v30  ;;  %v948_v34 = vmul.f32 %v912_v61, %v874_v31  ;;  %v949_v35 = vmul.f32 %v913_v7, %v877_v32  ;;  %994 = vmatprep.subr.bf16.mxu0 %v964_v29  ;;  %v977_v39 = vsel %vm975_vm10, %v967_v33, 0  ;;  %v1196_v31 = vld [vmem:[%s2876_s22 + $0x30] sm:$0xff]  ;;  %v1194_v33 = vld [vmem:[%s2876_s22 + $0x20] sm:$0xff] }
 0x22d   : > { %995 = vmatpush1.bf16.msra.mxu0 %v963_v26 }
 0x22e   : > { %v968_v36 = vpack.c.bf16 %v947_v47, %v947_v47  ;;  %v969_v37 = vpack.c.bf16 %v948_v34, %v948_v34  ;;  %v970_v38 = vpack.c.bf16 %v949_v35, %v949_v35  ;;  %v1197_v47 = vld [vmem:[%s2876_s22 + $0x38] sm:$0xff] }
 0x230   : > { %1909 = vmatprep.subr.msk.bf16.mxu0 %vm975_vm10, %v968_v36  ;;  %1911 = vmatprep.subr.msk.bf16.mxu1 %vm975_vm10, %v970_v38  ;;  %v983_v53 = vsel %vm975_vm10, %v969_v37, 0  ;;  %v1190_v36 = vld [vmem:[%s2876_s22] sm:$0xff]  ;;  %v1193_v37 = vld [vmem:[%s2876_s22 + $0x18] sm:$0xff] }
 0x231   : > { %997 = vmatpush1.bf16.msra.mxu0 %v977_v39  ;;  %1038 = vmatpush1.bf16.msra.mxu1 %v983_v53  ;;  %v1192_v53 = vld [vmem:[%s2876_s22 + $0x10] sm:$0xff] }
 0x234   : > { %1910 = vmatmul.mubr.msk.bf16.vlgmr.msra.gmra.mrb[4].mxu0 %vm971_vm11, %v950_v23  ;;  %1912 = vmatmul.mubr.msk.bf16.vlgmr.msra.gmra.mrb[4].mxu1 %vm971_vm11, %v950_v23 }
 0x235   : > { %1336 = vmatprep.mubr.bf16.mxu0 %v2003_v1  ;;  %1377 = vmatprep.mubr.bf16.mxu1 %v2003_v1 }
 0x23b   : > { %v1074_v40 = vpop.permute.xlu0 %1073  ;;  %v1084_v41 = vpop.permute.xlu1 %1083 }
 0x307   : > { %v1022_v42 = vpop.f32.mrb[4].mxu0  ;;  %v1063_v44 = vpop.f32.mrb[4].mxu1 }
 0x308   : > { %v1076_v45 = vmul.f32 %v1074_v40, %v1022_v42  ;;  %v1078_v48 = vmul.f32 %v1074_v40, %v1063_v44  ;;  %v1024_v49 = vpop.f32.mrb[5].mxu0  ;;  %v1065_v46 = vpop.f32.mrb[5].mxu1 }
 0x309   : > { %v1026_v50 = vpop.f32.mrb[6].mxu0  ;;  %v1067_v56 = vpop.f32.mrb[6].mxu1  ;;  %v1077_v62 = vmul.f32 %v1074_v40, %v1024_v49  ;;  %v1079_v2 = vmul.f32 %v1074_v40, %v1065_v46  ;;  %v1199_v46 = vld [vmem:[%s2876_s22 + $0x48] sm:$0xff] }
 0x30a   : > { %v1086_v43 = vadd.f32 %v1084_v41, %v1076_v45  ;;  %v1088_v52 = vadd.f32 %v1084_v41, %v1078_v48  ;;  %v1027_v54 = vpop.f32.mrb[7].mxu0  ;;  %v1068_v55 = vpop.f32.mrb[7].mxu1  ;;  %v1203_v56 = vld [vmem:[%s2876_s22 + $0x68] sm:$0xff] }
 0x30b   : > { %v1087_v63 = vadd.f32 %v1084_v41, %v1077_v62  ;;  %v1089_v3 = vadd.f32 %v1084_v41, %v1079_v2  ;;  %v1198_v2 = vld [vmem:[%s2876_s22 + $0x40] sm:$0xff] }
 0x30c   : > { %v2467_v57 = vmax.f32 %v1086_v43, 0.0  ;;  %v2469_v59 = vmax.f32 %v1088_v52, 0.0 }
 0x30d   : > { %v2495_v0 = vmax.f32 %v1087_v63, 0.0  ;;  %v2505_v4 = vmax.f32 %v1089_v3, 0.0  ;;  %v1207_v63 = vld [vmem:[%s2876_s22 + $0x88] sm:$0xff]  ;;  %v1201_v3 = vld [vmem:[%s2876_s22 + $0x58] sm:$0xff] }
 0x30e   : > { %1110 = vrot.lane.b32.xlu1 %v2469_v59, %s2008_s24  ;;  %1094 = vrot.lane.b32.xlu0 %v2467_v57, %s2006_s2 }
 0x312   : > { %1134 = vrot.lane.b32.xlu1 %v2469_v59, %s2011_s26  ;;  %1106 = vrot.lane.b32.xlu0 %v2467_v57, %s2008_s24 }
 0x316   : > { %1146 = vrot.lane.b32.xlu1 %v2469_v59, %s2871_s3  ;;  %1098 = vrot.lane.b32.xlu0 %v2469_v59, %s2006_s2 }
 0x31a   : > { %1158 = vrot.lane.b32.xlu1 %v2469_v59, %s2872_s1  ;;  %1118 = vrot.lane.b32.xlu0 %v2467_v57, %s2873_s25 }
 0x31e   : > { %1170 = vrot.lane.b32.xlu1 %v2469_v59, %s2874_s28  ;;  %1130 = vrot.lane.b32.xlu0 %v2467_v57, %s2011_s26 }
 0x322   : > { %1166 = vrot.lane.b32.xlu1 %v2467_v57, %s2874_s28  ;;  %1122 = vrot.lane.b32.xlu0 %v2469_v59, %s2873_s25 }
 0x326   : > { %1142 = vrot.lane.b32.xlu0 %v2467_v57, %s2871_s3  ;;  %1096 = vrot.lane.b32.xlu1 %v2495_v0, %s2006_s2 }
 0x32a   : > { %1154 = vrot.lane.b32.xlu0 %v2467_v57, %s2872_s1  ;;  %1108 = vrot.lane.b32.xlu1 %v2495_v0, %s2008_s24 }
 0x32e   : > { %1178 = vrot.lane.b32.xlu0 %v2467_v57, %s2875_s29  ;;  %1112 = vrot.lane.b32.xlu1 %v2505_v4, %s2008_s24 }
 0x332   : > { %1100 = vrot.lane.b32.xlu0 %v2505_v4, %s2006_s2  ;;  %1120 = vrot.lane.b32.xlu1 %v2495_v0, %s2873_s25 }
 0x336   : > { %1124 = vrot.lane.b32.xlu0 %v2505_v4, %s2873_s25  ;;  %1132 = vrot.lane.b32.xlu1 %v2495_v0, %s2011_s26 }
 0x33a   : > { %1144 = vrot.lane.b32.xlu0 %v2495_v0, %s2871_s3  ;;  %1136 = vrot.lane.b32.xlu1 %v2505_v4, %s2011_s26 }
 0x33e   : > { %1156 = vrot.lane.b32.xlu0 %v2495_v0, %s2872_s1  ;;  %1148 = vrot.lane.b32.xlu1 %v2505_v4, %s2871_s3 }
 0x342   : > { %1168 = vrot.lane.b32.xlu0 %v2495_v0, %s2874_s28  ;;  %1172 = vrot.lane.b32.xlu1 %v2505_v4, %s2874_s28 }
 0x346   : > { %1160 = vrot.lane.b32.xlu0 %v2505_v4, %s2872_s1  ;;  %1180 = vrot.lane.b32.xlu1 %v2495_v0, %s2875_s29  ;;  %s1932_s1 = sshll.u32 %s2878_s30, 5 }
 0x34a   : > { %1182 = vrot.lane.b32.xlu0 %v2469_v59, %s2875_s29  ;;  %1184 = vrot.lane.b32.xlu1 %v2505_v4, %s2875_s29  ;;  %s602_s29 = scalar_lea.vmem %s2851_s19, %s1932_s1 }
 0x34e   : > { %1286 = vperm.xlu0 %1981, %v1283_v6  }
 0x380   : > { %v1111_v8 = vpop.permute.xlu1 %1110  ;;  %v1095_v9 = vpop.permute.xlu0 %1094 }
 0x384   : > { %v2542_v5 = vpop.permute.xlu1 %1134  ;;  %v1107_v11 = vpop.permute.xlu0 %1106 }
 0x388   : > { %v2544_v51 = vpop.permute.xlu1 %1146  ;;  %v1099_v12 = vpop.permute.xlu0 %1098 }
 0x38c   : > { %v2546_v15 = vpop.permute.xlu1 %1158  ;;  %v1119_v16 = vpop.permute.xlu0 %1118 }
 0x390   : > { %v2548_v17 = vpop.permute.xlu1 %1170  ;;  %v2550_v18 = vpop.permute.xlu0 %1130 }
 0x394   : > { %v2552_v58 = vpop.permute.xlu1 %1166  ;;  %v1123_v19 = vpop.permute.xlu0 %1122 }
 0x398   : > { %v2554_v20 = vpop.permute.xlu0 %1142  ;;  %v1097_v21 = vpop.permute.xlu1 %1096 }
 0x399   : > { %v1104_v22 = vsel %vm782_vm2, %v1095_v9, %v1097_v21  ;;  %v1103_v23 = vsel %vm782_vm2, %v1097_v21, %v1099_v12  ;;  %v1204_v21 = vld [vmem:[%s2876_s22 + $0x70] sm:$0xff] }
 0x39a   : > { %v1227_v26 = vmul.f32 %v1191_v10, %v1104_v22  ;;  %v1228_v43 = vmul.f32 %v1192_v53, %v1103_v23  ;;  %v1208_v23 = vld [vmem:[%s2876_s22 + $0x90] sm:$0xff] }
 0x39c   : > { %v2564_v25 = vpop.permute.xlu0 %1154  ;;  %v1109_v61 = vpop.permute.xlu1 %1108 }
 0x39d   : > { %v1116_v7 = vsel %vm795_vm3, %v1107_v11, %v1109_v61  ;;  %v1115_v32 = vsel %vm795_vm3, %v1109_v61, %v1111_v8  ;;  %v1205_v61 = vld [vmem:[%s2876_s22 + $0x78] sm:$0xff] }
 0x39e   : > { %v1231_v27 = vmul.f32 %v1195_v24, %v1116_v7  ;;  %v1232_v40 = vmul.f32 %v1196_v31, %v1115_v32  ;;  %v1202_v24 = vld [vmem:[%s2876_s22 + $0x60] sm:$0xff]  ;;  %v1243_v7 = vmul.f32 %v1207_v63, %v2495_v0 }
 0x39f   : > { %v1206_v31 = vld [vmem:[%s2876_s22 + $0x80] sm:$0xff] }
 0x3a0   : > { %v2568_v28 = vpop.permute.xlu0 %1178  ;;  %v1113_v29 = vpop.permute.xlu1 %1112  ;;  %v1264_v30 = vpack.c.bf16 %v1231_v27, %v1227_v26  ;;  %v1200_v26 = vld [vmem:[%s2876_s22 + $0x50] sm:$0xff]  ;;  %v1210_v0 = vld [vmem:[%s2876_s22 + $0xa0] sm:$0xff] }
 0x3a1   : > { %v1114_v34 = vsel %vm795_vm3, %v1111_v8, %v1113_v29  ;;  %v1117_v35 = vsel %vm795_vm3, %v1113_v29, %v1107_v11  ;;  %v1265_v11 = vpack.c.bf16 %v1232_v40, %v1228_v43  ;;  %v1209_v40 = vld [vmem:[%s2876_s22 + $0x98] sm:$0xff] }
 0x3a2   : > { %1304 = vmatprep.subr.bf16.mxu0 %v1264_v30  ;;  %v1230_v44 = vmul.f32 %v1194_v33, %v1117_v35  ;;  %v1233_v45 = vmul.f32 %v1197_v47, %v1114_v34 }
 0x3a4   : > { %v1101_v38 = vpop.permute.xlu0 %1100  ;;  %v1121_v39 = vpop.permute.xlu1 %1120 }
 0x3a5   : > { %v1102_v41 = vsel %vm782_vm2, %v1099_v12, %v1101_v38  ;;  %v1105_v42 = vsel %vm782_vm2, %v1101_v38, %v1095_v9  ;;  %v1128_v50 = vsel %vm808_vm4, %v1119_v16, %v1121_v39  ;;  %v1127_v27 = vsel %vm808_vm4, %v1121_v39, %v1123_v19 }
 0x3a6   : > { %v1226_v48 = vmul.f32 %v1190_v36, %v1105_v42  ;;  %v1229_v49 = vmul.f32 %v1193_v37, %v1102_v41  ;;  %v1235_v12 = vmul.f32 %v1199_v46, %v1128_v50  ;;  %v1236_v41 = vmul.f32 %v1200_v26, %v1127_v27  ;;  %v1213_v42 = vld [vmem:[%s2876_s22 + $0xb8] sm:$0xff] }
 0x3a8   : > { %v1263_v52 = vpack.c.bf16 %v1230_v44, %v1226_v48  ;;  %v1125_v54 = vpop.permute.xlu0 %1124  ;;  %v1133_v55 = vpop.permute.xlu1 %1132  ;;  %v1266_v62 = vpack.c.bf16 %v1233_v45, %v1229_v49 }
 0x3a9   : > { %v1126_v6 = vsel %vm808_vm4, %v1123_v19, %v1125_v54  ;;  %v1129_v8 = vsel %vm808_vm4, %v1125_v54, %v1119_v16  ;;  %v1140_v9 = vsel %vm821_vm5, %v2550_v18, %v1133_v55  ;;  %v1139_v22 = vsel %vm821_vm5, %v1133_v55, %v2542_v5  ;;  %v1211_v16 = vld [vmem:[%s2876_s22 + $0xa8] sm:$0xff]  ;;  %v1214_v55 = vld [vmem:[%s2876_s22 + $0xc0] sm:$0xff] }
 0x3aa   : > { %v1239_v10 = vmul.f32 %v1203_v56, %v1140_v9  ;;  %1305 = vmatpush1.bf16.msra.mxu0 %v1263_v52  ;;  %1345 = vmatprep.subr.bf16.mxu1 %v1266_v62  ;;  %v1234_v29 = vmul.f32 %v1198_v2, %v1129_v8  ;;  %v1237_v30 = vmul.f32 %v1201_v3, %v1126_v6  ;;  %v1219_v2 = vld [vmem:[%s2876_s22 + $0xe8] sm:$0xff] }
 0x3ab   : > { %1346 = vmatpush1.bf16.msra.mxu1 %v1265_v11  ;;  %v1240_v37 = vmul.f32 %v1204_v21, %v1139_v22  ;;  %v1244_v56 = vmul.f32 %v1208_v23, %v2469_v59  ;;  %v1245_v52 = vmul.f32 %v1209_v40, %v2505_v4  ;;  %v1225_v23 = vld [vmem:[%s2876_s22 + $0x118] sm:$0xff] }
 0x3ac   : > { %v1145_v32 = vpop.permute.xlu0 %1144  ;;  %v1137_v33 = vpop.permute.xlu1 %1136  ;;  %v1268_v47 = vpack.c.bf16 %v1239_v10, %v1235_v12 }
 0x3ad   : > { %v1151_v34 = vsel %vm834_vm6, %v1145_v32, %v2544_v51  ;;  %v1152_v19 = vsel %vm834_vm6, %v2554_v20, %v1145_v32  ;;  %v1138_v35 = vsel %vm821_vm5, %v2542_v5, %v1137_v33  ;;  %v1141_v36 = vsel %vm821_vm5, %v1137_v33, %v2550_v18  ;;  %v1212_v18 = vld [vmem:[%s2876_s22 + $0xb0] sm:$0xff] }
 0x3ae   : > { %v1247_v38 = vmul.f32 %v1211_v16, %v1151_v34  ;;  %v1238_v39 = vmul.f32 %v1202_v24, %v1141_v36  ;;  %v1241_v53 = vmul.f32 %v1205_v61, %v1138_v35  ;;  %1306 = vmatprep.subr.bf16.mxu0 %v1268_v47  ;;  %v1242_v5 = vmul.f32 %v1206_v31, %v2467_v57  ;;  %v1220_v61 = vld [vmem:[%s2876_s22 + $0xf0] sm:$0xff]  ;;  %v1222_v31 = vld [vmem:[%s2876_s22 + $0x100] sm:$0xff] }
 0x3af   : > { %v1246_v44 = vmul.f32 %v1210_v0, %v1152_v19  ;;  %v1269_v54 = vpack.c.bf16 %v1240_v37, %v1236_v41 }
 0x3b0   : > { %v1267_v45 = vpack.c.bf16 %v1238_v39, %v1234_v29  ;;  %v1157_v48 = vpop.permute.xlu0 %1156  ;;  %v1149_v49 = vpop.permute.xlu1 %1148  ;;  %v1270_v46 = vpack.c.bf16 %v1241_v53, %v1237_v30  ;;  %v1272_v50 = vpack.c.bf16 %v1247_v38, %v1243_v7  ;;  %v1221_v7 = vld [vmem:[%s2876_s22 + $0xf8] sm:$0xff]  ;;  %v1216_v29 = vld [vmem:[%s2876_s22 + $0xd0] sm:$0xff]  ;;  %v1389_v39 = vcombine.high %v2149_v13, %v2149_v13 }
 0x3b1   : > { %v1150_v57 = vsel %vm834_vm6, %v2544_v51, %v1149_v49  ;;  %v1153_v43 = vsel %vm834_vm6, %v1149_v49, %v2554_v20  ;;  %v1164_v62 = vsel %vm847_vm7, %v2564_v25, %v1157_v48  ;;  %v1215_v51 = vld [vmem:[%s2876_s22 + $0xc8] sm:$0xff]  ;;  %v1163_v4 = vsel %vm847_vm7, %v1157_v48, %v2546_v15  ;;  %v1218_v20 = vld [vmem:[%s2876_s22 + $0xe0] sm:$0xff]  ;;  %v1217_v30 = vld [vmem:[%s2876_s22 + $0xd8] sm:$0xff] }
 0x3b2   : > { %v1248_v59 = vmul.f32 %v1212_v18, %v1150_v57  ;;  %v1249_v63 = vmul.f32 %v1213_v42, %v1153_v43  ;;  %1307 = vmatpush1.bf16.msra.mxu0 %v1267_v45  ;;  %1347 = vmatprep.subr.bf16.mxu1 %v1270_v46  ;;  %v1271_v3 = vpack.c.bf16 %v1246_v44, %v1242_v5 }
 0x3b3   : > { %1308 = vmatprep.subr.bf16.mxu0 %v1272_v50  ;;  %1348 = vmatpush1.bf16.msra.mxu1 %v1269_v54  ;;  %v1250_v12 = vmul.f32 %v1214_v55, %v1164_v62  ;;  %v1251_v22 = vmul.f32 %v1215_v51, %v1163_v4  ;;  %v1390_v53 = vcombine.high %v2152_v14, %v2152_v14  ;;  %v1994_v55 = vld [vmem:[%s2146_s20 + $0x8] sm:$0xff]  ;;  %v1386_v4 = vld [vmem:[%s2845_s13] sm:$0xf] }
 0x3b4   : > { %v1273_v6 = vpack.c.bf16 %v1248_v59, %v1244_v56  ;;  %v1169_v8 = vpop.permute.xlu0 %1168  ;;  %v1173_v9 = vpop.permute.xlu1 %1172  ;;  %v1274_v11 = vpack.c.bf16 %v1249_v63, %v1245_v52  ;;  %v1394_v46 = vpack.c.bf16 %v1389_v39, %v1389_v39  ;;  %v1993_v56 = vld [vmem:[%s2146_s20] sm:$0xff]  ;;  %v1395_v62 = vpack.c.bf16 %v1994_v55, %v1994_v55 }
 0x3b5   : > { %v1175_v21 = vsel %vm860_vm8, %v1169_v8, %v2548_v17  ;;  %v1176_v10 = vsel %vm860_vm8, %v2552_v58, %v1169_v8  ;;  %v1174_v26 = vsel %vm860_vm8, %v2548_v17, %v1173_v9  ;;  %v1177_v27 = vsel %vm860_vm8, %v1173_v9, %v2552_v58  ;;  %v1262_v59 = vld [vmem:[%s2843_s11] sm:$0xf] }
 0x3b6   : > { %v1254_v16 = vmul.f32 %v1218_v20, %v1176_v10  ;;  %v1255_v24 = vmul.f32 %v1219_v2, %v1175_v21  ;;  %1309 = vmatpush1.bf16.msra.mxu0 %v1271_v3  ;;  %1349 = vmatprep.subr.bf16.mxu1 %v1274_v11  ;;  %v1256_v0 = vmul.f32 %v1220_v61, %v1174_v26  ;;  %v1413_v51 = vsel %vm653_vm0, %v1395_v62, 0 }
 0x3b7   : > { %1350 = vmatpush1.bf16.msra.mxu1 %v1273_v6  ;;  %v1257_v35 = vmul.f32 %v1221_v7, %v1177_v27  ;;  %v1396_v50 = vpack.c.bf16 %v1390_v53, %v1390_v53  ;;  %v1393_v57 = vpack.c.bf16 %v1993_v56, %v1993_v56  ;;  %v2013_v7 = vmov 0.0  }
 0x3b8   : > { %v1275_v32 = vpack.c.bf16 %v1254_v16, %v1250_v12  ;;  %v1161_v17 = vpop.permute.xlu0 %1160  ;;  %v1181_v33 = vpop.permute.xlu1 %1180  ;;  %v1276_v47 = vpack.c.bf16 %v1255_v24, %v1251_v22 }
 0x3b9   : > { %v1162_v58 = vsel %vm847_vm7, %v2546_v15, %v1161_v17  ;;  %v1165_v34 = vsel %vm847_vm7, %v1161_v17, %v2564_v25  ;;  %v1188_v19 = vsel %vm873_vm9, %v2568_v28, %v1181_v33  ;;  %v1223_v15 = vld [vmem:[%s2876_s22 + $0x108] sm:$0xff]  ;;  %v1224_v25 = vld [vmem:[%s2876_s22 + $0x110] sm:$0xff]  ;;  %v1407_v63 = vsel %vm653_vm0, %v1393_v57, 0 }
 0x3ba   : > { %v1252_v36 = vmul.f32 %v1216_v29, %v1162_v58  ;;  %v1253_v37 = vmul.f32 %v1217_v30, %v1165_v34  ;;  %v1258_v38 = vmul.f32 %v1222_v31, %v1188_v19  ;;  %1310 = vmatprep.subr.bf16.mxu0 %v1276_v47  ;;  %v1397_v29 = vld [vmem:[%s2846_s14] sm:$0xff] }
 0x3bb   : > { %1311 = vmatpush1.bf16.msra.mxu0 %v1275_v32  ;;  %v1504_v19 = vld [vmem:[%s2847_s15] sm:$0xf] }
 0x3bc   : > { %v1277_v40 = vpack.c.bf16 %v1256_v0, %v1252_v36  ;;  %v1183_v41 = vpop.permute.xlu0 %1182  ;;  %v1185_v13 = vpop.permute.xlu1 %1184  ;;  %v1278_v5 = vpack.c.bf16 %v1257_v35, %v1253_v37  ;;  %v1279_v44 = vpack.c.bf16 %v1258_v38, %v1258_v38  ;;  %v1505_v36 = vld [vmem:[%s2848_s16] sm:$0xf] }
 0x3bd   : > { %v1187_v14 = vsel %vm873_vm9, %v1181_v33, %v1183_v41  ;;  %v1186_v18 = vsel %vm873_vm9, %v1183_v41, %v1185_v13  ;;  %v1189_v42 = vsel %vm873_vm9, %v1185_v13, %v2568_v28  ;;  %v1582_v13 = vld [vmem:[%s2850_s18] sm:$0xff] }
 0x3be   : > { %v1259_v45 = vmul.f32 %v1223_v15, %v1187_v14  ;;  %v1260_v48 = vmul.f32 %v1224_v25, %v1186_v18  ;;  %v1261_v49 = vmul.f32 %v1225_v23, %v1189_v42  ;;  %1351 = vmatprep.subr.bf16.mxu1 %v1278_v5  ;;  %v1293_v60 = vsel %vm975_vm10, %v1279_v44, 0  ;;  %v1581_v15 = vld [vmem:[%s2849_s17] sm:$0xff] }
 0x3bf   : > { %1352 = vmatpush1.bf16.msra.mxu1 %v1277_v40 }
 0x3c0   : > { %v1280_v43 = vpack.c.bf16 %v1259_v45, %v1259_v45  ;;  %v1281_v52 = vpack.c.bf16 %v1260_v48, %v1260_v48  ;;  %v1282_v54 = vpack.c.bf16 %v1261_v49, %v1261_v49 }
 0x3c2   : > { %1913 = vmatprep.subr.msk.bf16.mxu0 %vm975_vm10, %v1280_v43  ;;  %1915 = vmatprep.subr.msk.bf16.mxu1 %vm975_vm10, %v1282_v54  ;;  %v1299_v28 = vsel %vm975_vm10, %v1281_v52, 0 }
 0x3c3   : > { %1313 = vmatpush1.bf16.msra.mxu0 %v1293_v60  ;;  %1354 = vmatpush1.bf16.msra.mxu1 %v1299_v28 }
 0x3c4   : > { %1917 = vmatprep.subr.msk.bf16.mxu0 %vm653_vm0, %v1394_v46  ;;  %1919 = vmatprep.subr.msk.bf16.mxu1 %vm653_vm0, %v1396_v50 }
 0x3c6   : > { %1914 = vmatmul.mubr.msk.bf16.vlgmr.msra.gmra.mrb[8].mxu0 %vm971_vm11, %v1262_v59  ;;  %1916 = vmatmul.mubr.msk.bf16.vlgmr.msra.gmra.mrb[8].mxu1 %vm971_vm11, %v1262_v59 }
 0x3c7   : > { %1419 = vmatpush1.bf16.msra.mxu0 %v1407_v63  ;;  %1460 = vmatpush1.bf16.msra.mxu1 %v1413_v51 }
 0x3c8   : > { %1450 = vmatprep.mubr.bf16.mxu0 %v2003_v1  ;;  %1491 = vmatprep.mubr.bf16.mxu1 %v2003_v1 }
 0x3c9   : > { %1941 = vmatprep.subr.mxu0 %v2013_v7  ;;  %1946 = vmatprep.subr.mxu1 %v2013_v7 }
 0x3cd   : > { %v1287_v20 = vpop.permute.xlu0 %1286 }
 0x3ce   : > { %1918 = vmatmul.mubr.msk.bf16.vlgmr.msra.gmra.mrb[12].mxu0 %vm649_vm1, %v1386_v4  ;;  %1920 = vmatmul.mubr.msk.bf16.vlgmr.msra.gmra.mrb[12].mxu1 %vm649_vm1, %v1386_v4 }
 0x3cf   : > { %1943 = vmatprep.mubr.msk.f32.mxu0 %vm2014_vm12, %v2013_v7  ;;  %1948 = vmatprep.mubr.msk.f32.mxu1 %vm2014_vm12, %v2013_v7 }
 0x499   : > { %v1338_v2 = vpop.f32.mrb[8].mxu0  ;;  %v1379_v3 = vpop.f32.mrb[8].mxu1 }
 0x49a   : > { %v2780_v6 = vadd.f32 %v1338_v2, %v1287_v20  ;;  %v2782_v8 = vadd.f32 %v1379_v3, %v1287_v20  ;;  %v1340_v9 = vpop.f32.mrb[9].mxu0  ;;  %v1381_v11 = vpop.f32.mrb[9].mxu1 }
 0x49b   : > { %v2784_v12 = vadd.f32 %v1340_v9, %v1287_v20  ;;  %v2786_v1 = vadd.f32 %v1381_v11, %v1287_v20  ;;  %v1342_v21 = vpop.f32.mrb[10].mxu0  ;;  %v1383_v10 = vpop.f32.mrb[10].mxu1 }
 0x49c   : > { %v1343_v22 = vpop.f32.mrb[11].mxu0  ;;  %v1384_v16 = vpop.f32.mrb[11].mxu1 }
 0x49d   : > { %v1670_v24 = vadd.f32 %v2786_v1, %v2782_v8  ;;  %v1500_v61 = vadd.f32 %v2784_v12, %v2780_v6 }
 0x49f   : > { %1671 = vadd.xlane.f32.xlu0 %v1670_v24  ;;  %1501 = vadd.xlane.f32.xlu1 %v1500_v61 }
 0x4a1   : > { %v1452_v26 = vpop.f32.mrb[12].mxu0  ;;  %v2794_v27 = vpop.f32.mrb[12].mxu1 }
 0x4a2   : > { %v2799_v30 = vpop.f32.mrb[13].mxu1  ;;  %v1454_v17 = vpop.f32.mrb[13].mxu0 }
 0x4a3   : > { %v1497_v31 = vpop.f32.mrb[14].mxu1  ;;  %v1456_v33 = vpop.f32.mrb[14].mxu0 }
 0x4a4   : > { %v1498_v32 = vpop.f32.mrb[15].mxu1  ;;  %v1457_v47 = vpop.f32.mrb[15].mxu0 }
 0x4b5   : > { %1400 = vperm.xlu0 %1981, %v1397_v29  }
 0x52c   : > { %v1672_v0 = vpop.xlane.xlu0 %1671  ;;  %v1502_v58 = vpop.xlane.xlu1 %1501 }
 0x52d   : > { %v1503_v34 = vmul.f32 0.00390625, %v1502_v58  ;;  %v1673_v35 = vmul.f32 0.00390625, %v1672_v0 }
 0x52f   : > { %1942 = vmatpush3.msra.mxu0 %v1503_v34 }
 0x530   : > { %1944 = vmatmul.mubr.msk.f32.vlgmr.msra.gmra.mrb[16].mxu0 %vm1506_vm13, %v1504_v19  ;;  %1951 = vmatprep.subr.mxu0 %v2013_v7 }
 0x531   : > { %1952 = vmatpush3.msra.mxu0 %v1673_v35  ;;  %1953 = vmatprep.mubr.msk.f32.mxu0 %vm2014_vm12, %v2013_v7 }
 0x534   : > { %1954 = vmatmul.mubr.msk.f32.vlgmr.msra.gmra.mrb[18].mxu0 %vm1506_vm13, %v1504_v19  ;;  %v1401_v54 = vpop.permute.xlu0 %1400 }
 0x535   : > { %v1453_v62 = vadd.f32 %v1452_v26, %v1401_v54  ;;  %v1455_v60 = vadd.f32 %v1454_v17, %v1401_v54  ;;  %v1494_v20 = vadd.f32 %v2794_v27, %v1401_v54  ;;  %v1496_v2 = vadd.f32 %v2799_v30, %v1401_v54 }
 0x603   : > { %v1576_v37 = vpop.f32.mrb[16].mxu0 }
 0x604   : > { %v1577_v38 = vadd.f32 %v1576_v37, %v1505_v36  ;;  %v1945_v39 = vpop.f32.mrb[17].mxu0 }
 0x606   : > { %v1580_v53 = vmax.f32 %v1577_v38, 0.0 }
 0x607   : > { %v1740_v25 = vpop.f32.mrb[18].mxu0 }
 0x608   : > { %v1741_v23 = vadd.f32 %v1740_v25, %v1505_v36  ;;  %1947 = vmatpush3.msk.msra.mxu1 %vm975_vm10, %v1580_v53  ;;  %v1955_v40 = vpop.f32.mrb[19].mxu0 }
 0x609   : > { %1949 = vmatmul.mubr.msk.f32.vlgmr.msra.gmra.mrb[16].mxu1 %vm649_vm1, %v1581_v15  ;;  %1956 = vmatprep.subr.mxu1 %v2013_v7 }
 0x60a   : > { %v1744_v41 = vmax.f32 %v1741_v23, 0.0  ;;  %1958 = vmatprep.mubr.msk.f32.mxu1 %vm2014_vm12, %v2013_v7 }
 0x60c   : > { %1957 = vmatpush3.msk.msra.mxu1 %vm975_vm10, %v1744_v41 }
 0x60d   : > { %1959 = vmatmul.mubr.msk.f32.vlgmr.msra.gmra.mrb[18].mxu1 %vm649_vm1, %v1581_v15 }
 0x6dc   : > { %v1655_v5 = vpop.f32.mrb[16].mxu1 }
 0x6dd   : > { %v1656_v14 = vadd.f32 %v1655_v5, %v1582_v13  ;;  %v1950_v18 = vpop.f32.mrb[17].mxu1 }
 0x6df   : > { %v1924_v42 = vmul.f32 -1.442695, %v1656_v14 }
 0x6e0   : > { %v1814_v44 = vpop.f32.mrb[18].mxu1 }
 0x6e1   : > { %1985 = vpow2.f32 %v1924_v42  ;;  %v1815_v45 = vadd.f32 %v1814_v44, %v1582_v13  ;;  %v1960_v48 = vpop.f32.mrb[19].mxu1 }
 0x6e3   : > { %v1928_v49 = vmul.f32 -1.442695, %v1815_v45 }
 0x6e5   : > { %1987 = vpow2.f32 %v1928_v49 }
 0x6eb   : > { %v1986_v46 = vpop.eup %1985 }
 0x6ec   : > { %v1662_v50 = vadd.f32 1.0, %v1986_v46 }
 0x6ee   : > { %1989 = vrcp.f32 %v1662_v50 }
 0x6ef   : > { %v1988_v56 = vpop.eup %1987 }
 0x6f0   : > { %v1821_v57 = vadd.f32 1.0, %v1988_v56 }
 0x6f2   : > { %1991 = vrcp.f32 %v1821_v57 }
 0x6f8   : > { %v1990_v43 = vpop.eup %1989 }
 0x6f9   : > { %1667 = vperm.xlu1 %1982, %v1990_v43  }
 0x6fc   : > { %v1992_v52 = vpop.eup %1991 }
 0x6fd   : > { %1826 = vperm.xlu1 %1982, %v1992_v52  }
 0x778   : > { %v1668_v55 = vpop.permute.xlu1 %1667 }
 0x779   : > { %v1829_v28 = vmul.f32 %v1668_v55, %v2780_v6  ;;  %v1830_v59 = vmul.f32 %v1668_v55, %v2784_v12 }
 0x77b   : > { %v1833_v63 = vadd.f32 %v1829_v28, %v1453_v62  ;;  %v1834_v51 = vadd.f32 %v1830_v59, %v1455_v60 }
 0x77c   : > { %v1827_v4 = vpop.permute.xlu1 %1826 }
 0x77d   : > { %1837 = vst [vmem:[%s602_s29] sm:$0xff] %v1833_v63  ;;  %1838 = vst [vmem:[%s602_s29 + $0x8] sm:$0xff] %v1834_v51  ;;  %v1831_v3 = vmul.f32 %v1827_v4, %v2782_v8  ;;  %v1832_v9 = vmul.f32 %v1827_v4, %v2786_v1 }
 0x77f   : > { %v1835_v6 = vadd.f32 %v1831_v3, %v1494_v20  ;;  %v1836_v11 = vadd.f32 %v1832_v9, %v1496_v2 }
 0x781   : > { %1839 = vst [vmem:[%s602_s29 + $0x10] sm:$0xff] %v1835_v6  ;;  %1840 = vst [vmem:[%s602_s29 + $0x18] sm:$0xff] %v1836_v11 }
 0x782 PF: > { %s29_s0 = sadd.s32 1, %s2001_s0  }
 0x783   : > { %p26_p4 = scmp.ge.s32.totalorder %s29_s0, 4  }
 0x785   :  { %28 = sbr.rel (!%p26_p4) target bundleno = 5 (0x5), region = 126 }

</bundles_post_ra>
